<compile_context>
chip_gen: v7x
topology: tpu7x:2x2x1
jax: 0.10.0
libtpu: 0.0.40
codegen_flags: <defaults>
</compile_context>

<pallas_src>
import math
from collections import OrderedDict

import jax
import jax.numpy as jnp
from jax import lax
from jax.experimental import pallas as pl
from jax.experimental.pallas import tpu as pltpu

_BN_EPS = 1e-5
_BN_SCALE = 1.0 / math.sqrt(1.0 + _BN_EPS)          # eval-mode BN, default params
_VMEM_LIMIT = 32 * 1024 * 1024                      # > v5e's 16 MiB default; safe on v6e/v7x


def _round_up(x, m):
    return (x + m - 1) // m * m


def _multi_tc():
    """True if the chip has >1 TensorCore a 'parallel' grid axis can use."""
    try:
        kind = jax.devices()[0].device_kind.lower()
    except Exception:
        return False
    return any(t in kind for t in ("v7", "v4", "v5p"))


def _pick_col_tile(n, cap=512):
    """Lane tile: multiple of 128, <= cap, dividing n.  Only splits into >=2
    grid steps when the device actually has >1 TensorCore (review item)."""
    if n <= 128:
        return n
    best = None
    t = 128
    while t <= min(n, cap):
        if n % t == 0:
            best = t
        t += 128
    if best is None:
        return n                      # TODO(synk): pad N to a 128 multiple instead
    if _multi_tc() and n // best == 1 and best % 256 == 0:
        best //= 2
    return best


# ----------------------------------------------------------------------------
# Pallas kernels
# ----------------------------------------------------------------------------

def _ffn_stage_kernel(x_ref, w1_ref, w2_ref, o_ref):
    """blocks[i] x (Grapher[identity] -> FFN) on one lane tile.

    Activation carried in f32 across all blocks (residual in f32); MXU
    operands are bf16.  BN scale folded into weights, shift == 0 (dropped)."""
    act = x_ref[...].astype(jnp.float32)                         # (C, tn)
    for k in range(w1_ref.shape[0]):                             # static unroll
        h = jnp.dot(w1_ref[k], act.astype(jnp.bfloat16),
                    preferred_element_type=jnp.float32)
        h = jnp.maximum(h, 0.0)
        act = act + jnp.dot(w2_ref[k], h.astype(jnp.bfloat16),
                            preferred_element_type=jnp.float32)
    o_ref[...] = act.astype(o_ref.dtype)


def _make_ds_ffn_kernel(wh, lout):
    """Fused [3x3 stride-2 conv (+BN) -> blocks[i] x FFN] stage kernel.

    ph_ref : (4, Cin, Lin) bf16 — zero-padded input split into its 4 stride-2
             phases and flattened as (B, Hh, Wh); Lin >= Lout + Wh + 1 so every
             tap window below is a contiguous, in-bounds lane slice.
    wds_ref: (9, Cout, Cin) bf16 — conv taps in (ky, kx) order, BN scale folded.
    w1_ref : (nblk, 4C, C) bf16 ; w2_ref : (nblk, C, 4C) bf16.
    o_ref  : (Cout, Lout) bf16 — phase-grid layout (junk border cropped outside).
    """
    def kernel(ph_ref, wds_ref, w1_ref, w2_ref, o_ref):
        cout = o_ref.shape[0]
        phases = [ph_ref[p] for p in range(4)]                   # (Cin, Lin) each
        acc = jnp.zeros((cout, lout), jnp.float32)
        for ky in range(3):
            for kx in range(3):
                p = (ky % 2) * 2 + (kx % 2)
                d = (ky // 2) * wh + (kx // 2)
                tap = phases[p][:, d:d + lout]                   # contiguous window
                acc = acc + jnp.dot(wds_ref[ky * 3 + kx], tap,
                                    preferred_element_type=jnp.float32)
        act = acc                                                # f32 conv output
        for k in range(w1_ref.shape[0]):                         # FFN residual blocks
            h = jnp.dot(w1_ref[k], act.astype(jnp.bfloat16),
                        preferred_element_type=jnp.float32)
            h = jnp.maximum(h, 0.0)
            act = act + jnp.dot(w2_ref[k], h.astype(jnp.bfloat16),
                                preferred_element_type=jnp.float32)
        o_ref[...] = act.astype(o_ref.dtype)
    return kernel


# ----------------------------------------------------------------------------
# pallas_call wrappers
# ----------------------------------------------------------------------------

def ffn_stage(flat, w1, w2):
    c, n = flat.shape
    nblk, hid, _ = w1.shape
    cap = 512 if hid <= 512 else 256          # v7x VMEM guidance for big channels
    tn = _pick_col_tile(n, cap)
    return pl.pallas_call(
        _ffn_stage_kernel,
        out_shape=jax.ShapeDtypeStruct((c, n), jnp.bfloat16),
        grid_spec=pltpu.PrefetchScalarGridSpec(
            num_scalar_prefetch=0,
            grid=(n // tn,),
            in_specs=[
                pl.BlockSpec((c, tn), lambda j: (0, j)),
                pl.BlockSpec((nblk, hid, c), lambda j: (0, 0, 0)),
                pl.BlockSpec((nblk, c, hid), lambda j: (0, 0, 0)),
            ],
            out_specs=pl.BlockSpec((c, tn), lambda j: (0, j)),
        ),
        compiler_params=pltpu.CompilerParams(
            dimension_semantics=("parallel",),
            vmem_limit_bytes=_VMEM_LIMIT),
    )(flat, w1, w2)


def ds_ffn_stage(phases, wds, w1, w2, *, wh, lout):
    _, cin, lin = phases.shape
    _, cout, _ = wds.shape
    nblk, hid, _ = w1.shape
    kernel = _make_ds_ffn_kernel(wh, lout)
    return pl.pallas_call(
        kernel,
        out_shape=jax.ShapeDtypeStruct((cout, lout), jnp.bfloat16),
        grid_spec=pltpu.PrefetchScalarGridSpec(
            num_scalar_prefetch=0,
            grid=(1,),
            in_specs=[
                pl.BlockSpec((4, cin, lin), lambda j: (0, 0, 0)),
                pl.BlockSpec((9, cout, cin), lambda j: (0, 0, 0)),
                pl.BlockSpec((nblk, hid, cout), lambda j: (0, 0, 0)),
                pl.BlockSpec((nblk, cout, hid), lambda j: (0, 0, 0)),
            ],
            out_specs=pl.BlockSpec((cout, lout), lambda j: (0, 0)),
        ),
        compiler_params=pltpu.CompilerParams(
            dimension_semantics=("arbitrary",),
            vmem_limit_bytes=_VMEM_LIMIT),
    )(phases, wds, w1, w2)


# ----------------------------------------------------------------------------
# XLA glue: phase split for the downsample input, layout crops at stage edges
# ----------------------------------------------------------------------------

def _phase_split(x_cbhw, lout):
    """(C, B, H, W) bf16 -> (4, C, Lin) bf16 zero-padded stride-2 phases."""
    c, b, h, w = x_cbhw.shape
    assert h % 2 == 0 and w % 2 == 0
    xp = jnp.pad(x_cbhw, ((0, 0), (0, 0), (1, 1), (1, 1)))      # conv padding=1
    hh, wh = (h + 2) // 2, (w + 2) // 2
    phases = jnp.stack([xp[:, :, py::2, px::2] for py in (0, 1) for px in (0, 1)])
    l_real = b * hh * wh
    phases = phases.reshape(4, c, l_real)
    lin = _round_up(lout + wh + 1, 128)       # room for the largest tap shift
    phases = jnp.pad(phases, ((0, 0), (0, 0), (0, lin - l_real)))
    return phases, hh, wh


def _layer_indices(blocks):
    b0, b1, b2, b3 = blocks
    return [2 * b0 - 1, 2 * (b0 + b1), 2 * (b0 + b1 + b2) + 1,
            2 * (b0 + b1 + b2 + b3) + 2]


# ----------------------------------------------------------------------------
# DeepGCN forward (mirrors the PyTorch backbone loop, one fused call per stage)
# ----------------------------------------------------------------------------

def deepgcn_forward(params, blocks, x_nchw, h0_nchw):
    del h0_nchw  # never consumed (Grapher is an identity placeholder); TODO(synk)
    layer_idx = _layer_indices(blocks)
    bsz, c0, h, w = x_nchw.shape
    outs = OrderedDict()

    # ---- stage 0: blocks[0] x (Grapher[id] + FFN) ---------------------------
    cur = jnp.transpose(x_nchw, (1, 0, 2, 3)).astype(jnp.bfloat16)   # (C0,B,H,W)
    flat = ffn_stage(cur.reshape(c0, bsz * h * w), params[0]["w1"], params[0]["w2"])
    cur = flat.reshape(c0, bsz, h, w)
    outs[str(layer_idx[0])] = jnp.transpose(cur, (1, 0, 2, 3)).astype(jnp.float32)

    # ---- stages 1..3: fused [downsample + blocks[i] x FFN] ------------------
    for s in range(1, len(blocks)):
        p = params[s]
        cout = p["wds"].shape[1]
        ho, wo = h // 2, w // 2
        hh, wh = ho + 1, wo + 1
        lout = _round_up(max(bsz * hh * wh, 128), 128)   # lane-dense kernel output
        phases, hh, wh = _phase_split(cur, lout)
        out_flat = ds_ffn_stage(phases, p["wds"], p["w1"], p["w2"], wh=wh, lout=lout)
        # crop phase-grid junk border and lane padding back to the real map
        cur = out_flat[:, :bsz * hh * wh].reshape(cout, bsz, hh, wh)[:, :, :ho, :wo]
        outs[str(layer_idx[s])] = jnp.transpose(cur, (1, 0, 2, 3)).astype(jnp.float32)
        h, w = ho, wo
    return outs


# ----------------------------------------------------------------------------
# Parameter construction (Kaiming-normal like model_init, eval-BN scale folded)
# ----------------------------------------------------------------------------

def _kaiming(key, shape, fan_in):
    return jax.random.normal(key, shape, jnp.float32) * math.sqrt(2.0 / fan_in)


def build_deepgcn_params(key, blocks, channels):
    stages = []
    keys = iter(jax.random.split(key, 64))
    for i in range(len(blocks)):
        p = {}
        c = channels[i]
        if i > 0:
            cin = channels[i - 1]
            w = _kaiming(next(keys), (c, cin, 3, 3), cin * 9)          # torch OIHW
            wds = jnp.transpose(w, (2, 3, 0, 1)).reshape(9, c, cin)     # tap-major
            p["wds"] = (wds * _BN_SCALE).astype(jnp.bfloat16)
        hid = 4 * c
        w1s, w2s = [], []
        for _ in range(blocks[i]):
            w1s.append(_kaiming(next(keys), (hid, c), c) * _BN_SCALE)   # fc1 (out,in)
            w2s.append(_kaiming(next(keys), (c, hid), hid) * _BN_SCALE) # fc2
        p["w1"] = jnp.stack(w1s).astype(jnp.bfloat16)                   # (nblk,4C,C)
        p["w2"] = jnp.stack(w2s).astype(jnp.bfloat16)                   # (nblk,C,4C)
        stages.append(p)
    return stages


# ----------------------------------------------------------------------------
# Pure-JAX reference (independent math, same bf16-operand / f32-carry policy)
# ----------------------------------------------------------------------------

def _reference_forward(params, blocks, x_nchw):
    def q(a):                                     # bf16 quantization points
        return a.astype(jnp.bfloat16).astype(jnp.float32)

    layer_idx = _layer_indices(blocks)
    outs = OrderedDict()
    act = q(x_nchw)
    for s in range(len(blocks)):
        p = params[s]
        if s > 0:
            wds = p["wds"].astype(jnp.float32)                      # (9,cout,cin)
            cout, cin = wds.shape[1], wds.shape[2]
            w4 = wds.reshape(3, 3, cout, cin).transpose(2, 3, 0, 1)  # OIHW
            act = lax.conv_general_dilated(
                q(act), w4, window_strides=(2, 2), padding=((1, 1), (1, 1)),
                dimension_numbers=("NCHW", "OIHW", "NCHW"))
        for k in range(blocks[s]):
            w1 = p["w1"][k].astype(jnp.float32)
            w2 = p["w2"][k].astype(jnp.float32)
            hid = jnp.maximum(jnp.einsum("oc,bchw->bohw", w1, q(act)), 0.0)
            act = act + jnp.einsum("oc,bchw->bohw", w2, q(hid))
        act = q(act)                                                # bf16 handoff
        outs[str(layer_idx[s])] = act
    return outs


# ----------------------------------------------------------------------------
# Main
# ----------------------------------------------------------------------------

if __name__ == "__main__":
    key = jax.random.PRNGKey(0)
    k_param, k_x = jax.random.split(key)

    blocks = [1, 1, 1, 1]
    channels = [8, 16, 32, 64]
    params = build_deepgcn_params(k_param, blocks, channels)

    # Forward input is the post-stem feature map: (B, channels[0], H, W)
    B, C0, H, W = 2, channels[0], 16, 16
    x = jax.random.normal(k_x, (B, C0, H, W), jnp.float32)
    h0 = jnp.zeros_like(x)

    fwd = jax.jit(lambda xx, hh: deepgcn_forward(params, blocks, xx, hh))
    outs = fwd(x, h0)
    outs = jax.tree_util.tree_map(jax.block_until_ready, outs)

    expected = {
        "1": (B, channels[0], H, W),
        "4": (B, channels[1], H // 2, W // 2),
        "7": (B, channels[2], H // 4, W // 4),
        "10": (B, channels[3], H // 8, W // 8),
    }
    refs = _reference_forward(params, blocks, x)
    for name, val in outs.items():
        assert val.shape == expected[name], (name, val.shape, expected[name])
        assert bool(jnp.all(jnp.isfinite(val))), name
        ref = refs[name]
        err = float(jnp.max(jnp.abs(val - ref)) / (jnp.max(jnp.abs(ref)) + 1e-6))
        assert err < 0.05, (name, err)

    print("KERNEL_OK")
</pallas_src>

<mosaic_0001>
module attributes {stable_mosaic.version = 11 : i64} {
  func.func @_ffn_stage_kernel(%arg0: i32, %arg1: memref<8x512xbf16, #tpu.memory_space<vmem>>, %arg2: memref<1x32x8xbf16, #tpu.memory_space<vmem>>, %arg3: memref<1x8x32xbf16, #tpu.memory_space<vmem>>, %arg4: memref<8x512xbf16, #tpu.memory_space<vmem>>) attributes {dimension_semantics = [#tpu.dimension_semantics<parallel>], iteration_bounds = array<i64: 1>, scalar_prefetch = 0 : i64, scratch_operands = 0 : i64, tpu.core_type = #tpu.core_type<tc>, window_params = [{transform_indices = @transform_0, window_bounds = array<i64: 8, 512>}, {pipeline_mode = #tpu.pipeline_mode<synchronous>, transform_indices = @transform_1, window_bounds = array<i64: 1, 32, 8>}, {pipeline_mode = #tpu.pipeline_mode<synchronous>, transform_indices = @transform_2, window_bounds = array<i64: 1, 8, 32>}, {transform_indices = @transform_3, window_bounds = array<i64: 8, 512>}]} {
    %c0 = arith.constant 0 : index
    %c0_0 = arith.constant 0 : index
    %0 = vector.load %arg1[%c0, %c0_0] : memref<8x512xbf16, #tpu.memory_space<vmem>>, vector<8x512xbf16>
    %1 = arith.extf %0 : vector<8x512xbf16> to vector<8x512xf32>
    %c0_1 = arith.constant 0 : index
    %c0_2 = arith.constant 0 : index
    %c0_3 = arith.constant 0 : index
    %2 = vector.load %arg2[%c0_1, %c0_2, %c0_3] : memref<1x32x8xbf16, #tpu.memory_space<vmem>>, vector<1x32x8xbf16>
    %3 = vector.shape_cast %2 : vector<1x32x8xbf16> to vector<32x8xbf16>
    %4 = arith.truncf %1 : vector<8x512xf32> to vector<8x512xbf16>
    %cst = arith.constant dense<0.000000e+00> : vector<32x512xf32>
    %5 = tpu.matmul %3, %4, %cst {dimension_numbers = #tpu.dot_dimension_numbers<[1], [0], [0], [1], [0, 0, 1, 1], [], []>} : vector<32x8xbf16>, vector<8x512xbf16>, vector<32x512xf32> -> vector<32x512xf32>
    %cst_4 = arith.constant 0.000000e+00 : f32
    %6 = vector.broadcast %cst_4 : f32 to vector<32x512xf32>
    %7 = arith.maximumf %5, %6 : vector<32x512xf32>
    %c0_5 = arith.constant 0 : index
    %c0_6 = arith.constant 0 : index
    %c0_7 = arith.constant 0 : index
    %8 = vector.load %arg3[%c0_5, %c0_6, %c0_7] : memref<1x8x32xbf16, #tpu.memory_space<vmem>>, vector<1x8x32xbf16>
    %9 = vector.shape_cast %8 : vector<1x8x32xbf16> to vector<8x32xbf16>
    %10 = arith.truncf %7 : vector<32x512xf32> to vector<32x512xbf16>
    %cst_8 = arith.constant dense<0.000000e+00> : vector<8x512xf32>
    %11 = tpu.matmul %9, %10, %cst_8 {dimension_numbers = #tpu.dot_dimension_numbers<[1], [0], [0], [1], [0, 0, 1, 1], [], []>} : vector<8x32xbf16>, vector<32x512xbf16>, vector<8x512xf32> -> vector<8x512xf32>
    %12 = arith.addf %1, %11 : vector<8x512xf32>
    %13 = arith.truncf %12 : vector<8x512xf32> to vector<8x512xbf16>
    %c0_9 = arith.constant 0 : index
    %c0_10 = arith.constant 0 : index
    %14 = vector.load %arg4[%c0_9, %c0_10] : memref<8x512xbf16, #tpu.memory_space<vmem>>, vector<8x512xbf16>
    tpu.vector_store %arg4[%c0_9, %c0_10], %13 {strides = array<i32>} : memref<8x512xbf16, #tpu.memory_space<vmem>>, vector<8x512xbf16>,
    return
  }
  func.func @transform_0(%arg0: i32) -> (i32, i32) {
    %c0_i32 = arith.constant 0 : i32
    %c0_i32_0 = arith.constant 0 : i32
    return %c0_i32, %arg0 : i32, i32
  }
  func.func @transform_1(%arg0: i32) -> (i32, i32, i32) {
    %c0_i32 = arith.constant 0 : i32
    %c0_i32_0 = arith.constant 0 : i32
    %c0_i32_1 = arith.constant 0 : i32
    %c0_i32_2 = arith.constant 0 : i32
    return %c0_i32, %c0_i32_0, %c0_i32_1 : i32, i32, i32
  }
  func.func @transform_2(%arg0: i32) -> (i32, i32, i32) {
    %c0_i32 = arith.constant 0 : i32
    %c0_i32_0 = arith.constant 0 : i32
    %c0_i32_1 = arith.constant 0 : i32
    %c0_i32_2 = arith.constant 0 : i32
    return %c0_i32, %c0_i32_0, %c0_i32_1 : i32, i32, i32
  }
  func.func @transform_3(%arg0: i32) -> (i32, i32) {
    %c0_i32 = arith.constant 0 : i32
    %c0_i32_0 = arith.constant 0 : i32
    return %c0_i32, %arg0 : i32, i32
  }
}

module attributes {stable_mosaic.version = 11 : i64} {
  func.func @kernel(%arg0: i32, %arg1: memref<4x8x384xbf16, #tpu.memory_space<vmem>>, %arg2: memref<9x16x8xbf16, #tpu.memory_space<vmem>>, %arg3: memref<1x64x16xbf16, #tpu.memory_space<vmem>>, %arg4: memref<1x16x64xbf16, #tpu.memory_space<vmem>>, %arg5: memref<16x256xbf16, #tpu.memory_space<vmem>>) attributes {dimension_semantics = [#tpu.dimension_semantics<arbitrary>], iteration_bounds = array<i64: 1>, scalar_prefetch = 0 : i64, scratch_operands = 0 : i64, tpu.core_type = #tpu.core_type<tc>, window_params = [{pipeline_mode = #tpu.pipeline_mode<synchronous>, transform_indices = @transform_0, window_bounds = array<i64: 4, 8, 384>}, {pipeline_mode = #tpu.pipeline_mode<synchronous>, transform_indices = @transform_1, window_bounds = array<i64: 9, 16, 8>}, {pipeline_mode = #tpu.pipeline_mode<synchronous>, transform_indices = @transform_2, window_bounds = array<i64: 1, 64, 16>}, {pipeline_mode = #tpu.pipeline_mode<synchronous>, transform_indices = @transform_3, window_bounds = array<i64: 1, 16, 64>}, {pipeline_mode = #tpu.pipeline_mode<synchronous>, transform_indices = @transform_4, window_bounds = array<i64: 16, 256>}]} {
    %c0 = arith.constant 0 : index
    %c0_0 = arith.constant 0 : index
    %c0_1 = arith.constant 0 : index
    %0 = vector.load %arg1[%c0, %c0_0, %c0_1] : memref<4x8x384xbf16, #tpu.memory_space<vmem>>, vector<1x8x384xbf16>
    %1 = vector.shape_cast %0 : vector<1x8x384xbf16> to vector<8x384xbf16>
    %c1 = arith.constant 1 : index
    %c0_2 = arith.constant 0 : index
    %c0_3 = arith.constant 0 : index
    %2 = vector.load %arg1[%c1, %c0_2, %c0_3] : memref<4x8x384xbf16, #tpu.memory_space<vmem>>, vector<1x8x384xbf16>
    %3 = vector.shape_cast %2 : vector<1x8x384xbf16> to vector<8x384xbf16>
    %c2 = arith.constant 2 : index
    %c0_4 = arith.constant 0 : index
    %c0_5 = arith.constant 0 : index
    %4 = vector.load %arg1[%c2, %c0_4, %c0_5] : memref<4x8x384xbf16, #tpu.memory_space<vmem>>, vector<1x8x384xbf16>
    %5 = vector.shape_cast %4 : vector<1x8x384xbf16> to vector<8x384xbf16>
    %c3 = arith.constant 3 : index
    %c0_6 = arith.constant 0 : index
    %c0_7 = arith.constant 0 : index
    %6 = vector.load %arg1[%c3, %c0_6, %c0_7] : memref<4x8x384xbf16, #tpu.memory_space<vmem>>, vector<1x8x384xbf16>
    %7 = vector.shape_cast %6 : vector<1x8x384xbf16> to vector<8x384xbf16>
    %cst = arith.constant 0.000000e+00 : f32
    %8 = vector.broadcast %cst : f32 to vector<16x256xf32>
    %9 = vector.extract_strided_slice %1 {offsets = [0, 0], sizes = [8, 256], strides = [1, 1]} : vector<8x384xbf16> to vector<8x256xbf16>
    %c0_8 = arith.constant 0 : index
    %c0_9 = arith.constant 0 : index
    %c0_10 = arith.constant 0 : index
    %10 = vector.load %arg2[%c0_8, %c0_9, %c0_10] : memref<9x16x8xbf16, #tpu.memory_space<vmem>>, vector<1x16x8xbf16>
    %11 = vector.shape_cast %10 : vector<1x16x8xbf16> to vector<16x8xbf16>
    %cst_11 = arith.constant dense<0.000000e+00> : vector<16x256xf32>
    %12 = tpu.matmul %11, %9, %cst_11 {dimension_numbers = #tpu.dot_dimension_numbers<[1], [0], [0], [1], [0, 0, 1, 1], [], []>} : vector<16x8xbf16>, vector<8x256xbf16>, vector<16x256xf32> -> vector<16x256xf32>
    %13 = arith.addf %8, %12 : vector<16x256xf32>
    %14 = vector.extract_strided_slice %3 {offsets = [0, 0], sizes = [8, 256], strides = [1, 1]} : vector<8x384xbf16> to vector<8x256xbf16>
    %c1_12 = arith.constant 1 : index
    %c0_13 = arith.constant 0 : index
    %c0_14 = arith.constant 0 : index
    %15 = vector.load %arg2[%c1_12, %c0_13, %c0_14] : memref<9x16x8xbf16, #tpu.memory_space<vmem>>, vector<1x16x8xbf16>
    %16 = vector.shape_cast %15 : vector<1x16x8xbf16> to vector<16x8xbf16>
    %cst_15 = arith.constant dense<0.000000e+00> : vector<16x256xf32>
    %17 = tpu.matmul %16, %14, %cst_15 {dimension_numbers = #tpu.dot_dimension_numbers<[1], [0], [0], [1], [0, 0, 1, 1], [], []>} : vector<16x8xbf16>, vector<8x256xbf16>, vector<16x256xf32> -> vector<16x256xf32>
    %18 = arith.addf %13, %17 : vector<16x256xf32>
    %19 = vector.extract_strided_slice %1 {offsets = [0, 1], sizes = [8, 256], strides = [1, 1]} : vector<8x384xbf16> to vector<8x256xbf16>
    %c2_16 = arith.constant 2 : index
    %c0_17 = arith.constant 0 : index
    %c0_18 = arith.constant 0 : index
    %20 = vector.load %arg2[%c2_16, %c0_17, %c0_18] : memref<9x16x8xbf16, #tpu.memory_space<vmem>>, vector<1x16x8xbf16>
    %21 = vector.shape_cast %20 : vector<1x16x8xbf16> to vector<16x8xbf16>
    %cst_19 = arith.constant dense<0.000000e+00> : vector<16x256xf32>
    %22 = tpu.matmul %21, %19, %cst_19 {dimension_numbers = #tpu.dot_dimension_numbers<[1], [0], [0], [1], [0, 0, 1, 1], [], []>} : vector<16x8xbf16>, vector<8x256xbf16>, vector<16x256xf32> -> vector<16x256xf32>
    %23 = arith.addf %18, %22 : vector<16x256xf32>
    %24 = vector.extract_strided_slice %5 {offsets = [0, 0], sizes = [8, 256], strides = [1, 1]} : vector<8x384xbf16> to vector<8x256xbf16>
    %c3_20 = arith.constant 3 : index
    %c0_21 = arith.constant 0 : index
    %c0_22 = arith.constant 0 : index
    %25 = vector.load %arg2[%c3_20, %c0_21, %c0_22] : memref<9x16x8xbf16, #tpu.memory_space<vmem>>, vector<1x16x8xbf16>
    %26 = vector.shape_cast %25 : vector<1x16x8xbf16> to vector<16x8xbf16>
    %cst_23 = arith.constant dense<0.000000e+00> : vector<16x256xf32>
    %27 = tpu.matmul %26, %24, %cst_23 {dimension_numbers = #tpu.dot_dimension_numbers<[1], [0], [0], [1], [0, 0, 1, 1], [], []>} : vector<16x8xbf16>, vector<8x256xbf16>, vector<16x256xf32> -> vector<16x256xf32>
    %28 = arith.addf %23, %27 : vector<16x256xf32>
    %29 = vector.extract_strided_slice %7 {offsets = [0, 0], sizes = [8, 256], strides = [1, 1]} : vector<8x384xbf16> to vector<8x256xbf16>
    %c4 = arith.constant 4 : index
    %c0_24 = arith.constant 0 : index
    %c0_25 = arith.constant 0 : index
    %30 = vector.load %arg2[%c4, %c0_24, %c0_25] : memref<9x16x8xbf16, #tpu.memory_space<vmem>>, vector<1x16x8xbf16>
    %31 = vector.shape_cast %30 : vector<1x16x8xbf16> to vector<16x8xbf16>
    %cst_26 = arith.constant dense<0.000000e+00> : vector<16x256xf32>
    %32 = tpu.matmul %31, %29, %cst_26 {dimension_numbers = #tpu.dot_dimension_numbers<[1], [0], [0], [1], [0, 0, 1, 1], [], []>} : vector<16x8xbf16>, vector<8x256xbf16>, vector<16x256xf32> -> vector<16x256xf32>
    %33 = arith.addf %28, %32 : vector<16x256xf32>
    %34 = vector.extract_strided_slice %5 {offsets = [0, 1], sizes = [8, 256], strides = [1, 1]} : vector<8x384xbf16> to vector<8x256xbf16>
    %c5 = arith.constant 5 : index
    %c0_27 = arith.constant 0 : index
    %c0_28 = arith.constant 0 : index
    %35 = vector.load %arg2[%c5, %c0_27, %c0_28] : memref<9x16x8xbf16, #tpu.memory_space<vmem>>, vector<1x16x8xbf16>
    %36 = vector.shape_cast %35 : vector<1x16x8xbf16> to vector<16x8xbf16>
    %cst_29 = arith.constant dense<0.000000e+00> : vector<16x256xf32>
    %37 = tpu.matmul %36, %34, %cst_29 {dimension_numbers = #tpu.dot_dimension_numbers<[1], [0], [0], [1], [0, 0, 1, 1], [], []>} : vector<16x8xbf16>, vector<8x256xbf16>, vector<16x256xf32> -> vector<16x256xf32>
    %38 = arith.addf %33, %37 : vector<16x256xf32>
    %39 = vector.extract_strided_slice %1 {offsets = [0, 9], sizes = [8, 256], strides = [1, 1]} : vector<8x384xbf16> to vector<8x256xbf16>
    %c6 = arith.constant 6 : index
    %c0_30 = arith.constant 0 : index
    %c0_31 = arith.constant 0 : index
    %40 = vector.load %arg2[%c6, %c0_30, %c0_31] : memref<9x16x8xbf16, #tpu.memory_space<vmem>>, vector<1x16x8xbf16>
    %41 = vector.shape_cast %40 : vector<1x16x8xbf16> to vector<16x8xbf16>
    %cst_32 = arith.constant dense<0.000000e+00> : vector<16x256xf32>
    %42 = tpu.matmul %41, %39, %cst_32 {dimension_numbers = #tpu.dot_dimension_numbers<[1], [0], [0], [1], [0, 0, 1, 1], [], []>} : vector<16x8xbf16>, vector<8x256xbf16>, vector<16x256xf32> -> vector<16x256xf32>
    %43 = arith.addf %38, %42 : vector<16x256xf32>
    %44 = vector.extract_strided_slice %3 {offsets = [0, 9], sizes = [8, 256], strides = [1, 1]} : vector<8x384xbf16> to vector<8x256xbf16>
    %c7 = arith.constant 7 : index
    %c0_33 = arith.constant 0 : index
    %c0_34 = arith.constant 0 : index
    %45 = vector.load %arg2[%c7, %c0_33, %c0_34] : memref<9x16x8xbf16, #tpu.memory_space<vmem>>, vector<1x16x8xbf16>
    %46 = vector.shape_cast %45 : vector<1x16x8xbf16> to vector<16x8xbf16>
    %cst_35 = arith.constant dense<0.000000e+00> : vector<16x256xf32>
    %47 = tpu.matmul %46, %44, %cst_35 {dimension_numbers = #tpu.dot_dimension_numbers<[1], [0], [0], [1], [0, 0, 1, 1], [], []>} : vector<16x8xbf16>, vector<8x256xbf16>, vector<16x256xf32> -> vector<16x256xf32>
    %48 = arith.addf %43, %47 : vector<16x256xf32>
    %49 = vector.extract_strided_slice %1 {offsets = [0, 10], sizes = [8, 256], strides = [1, 1]} : vector<8x384xbf16> to vector<8x256xbf16>
    %c8 = arith.constant 8 : index
    %c0_36 = arith.constant 0 : index
    %c0_37 = arith.constant 0 : index
    %50 = vector.load %arg2[%c8, %c0_36, %c0_37] : memref<9x16x8xbf16, #tpu.memory_space<vmem>>, vector<1x16x8xbf16>
    %51 = vector.shape_cast %50 : vector<1x16x8xbf16> to vector<16x8xbf16>
    %cst_38 = arith.constant dense<0.000000e+00> : vector<16x256xf32>
    %52 = tpu.matmul %51, %49, %cst_38 {dimension_numbers = #tpu.dot_dimension_numbers<[1], [0], [0], [1], [0, 0, 1, 1], [], []>} : vector<16x8xbf16>, vector<8x256xbf16>, vector<16x256xf32> -> vector<16x256xf32>
    %53 = arith.addf %48, %52 : vector<16x256xf32>
    %c0_39 = arith.constant 0 : index
    %c0_40 = arith.constant 0 : index
    %c0_41 = arith.constant 0 : index
    %54 = vector.load %arg3[%c0_39, %c0_40, %c0_41] : memref<1x64x16xbf16, #tpu.memory_space<vmem>>, vector<1x64x16xbf16>
    %55 = vector.shape_cast %54 : vector<1x64x16xbf16> to vector<64x16xbf16>
    %56 = arith.truncf %53 : vector<16x256xf32> to vector<16x256xbf16>
    %cst_42 = arith.constant dense<0.000000e+00> : vector<64x256xf32>
    %57 = tpu.matmul %55, %56, %cst_42 {dimension_numbers = #tpu.dot_dimension_numbers<[1], [0], [0], [1], [0, 0, 1, 1], [], []>} : vector<64x16xbf16>, vector<16x256xbf16>, vector<64x256xf32> -> vector<64x256xf32>
    %cst_43 = arith.constant 0.000000e+00 : f32
    %58 = vector.broadcast %cst_43 : f32 to vector<64x256xf32>
    %59 = arith.maximumf %57, %58 : vector<64x256xf32>
    %c0_44 = arith.constant 0 : index
    %c0_45 = arith.constant 0 : index
    %c0_46 = arith.constant 0 : index
    %60 = vector.load %arg4[%c0_44, %c0_45, %c0_46] : memref<1x16x64xbf16, #tpu.memory_space<vmem>>, vector<1x16x64xbf16>
    %61 = vector.shape_cast %60 : vector<1x16x64xbf16> to vector<16x64xbf16>
    %62 = arith.truncf %59 : vector<64x256xf32> to vector<64x256xbf16>
    %cst_47 = arith.constant dense<0.000000e+00> : vector<16x256xf32>
    %63 = tpu.matmul %61, %62, %cst_47 {dimension_numbers = #tpu.dot_dimension_numbers<[1], [0], [0], [1], [0, 0, 1, 1], [], []>} : vector<16x64xbf16>, vector<64x256xbf16>, vector<16x256xf32> -> vector<16x256xf32>
    %64 = arith.addf %53, %63 : vector<16x256xf32>
    %65 = arith.truncf %64 : vector<16x256xf32> to vector<16x256xbf16>
    %c0_48 = arith.constant 0 : index
    %c0_49 = arith.constant 0 : index
    %66 = vector.load %arg5[%c0_48, %c0_49] : memref<16x256xbf16, #tpu.memory_space<vmem>>, vector<16x256xbf16>
    tpu.vector_store %arg5[%c0_48, %c0_49], %65 {strides = array<i32>} : memref<16x256xbf16, #tpu.memory_space<vmem>>, vector<16x256xbf16>,
    return
  }
  func.func @transform_0(%arg0: i32) -> (i32, i32, i32) {
    %c0_i32 = arith.constant 0 : i32
    %c0_i32_0 = arith.constant 0 : i32
    %c0_i32_1 = arith.constant 0 : i32
    %c0_i32_2 = arith.constant 0 : i32
    return %c0_i32, %c0_i32_0, %c0_i32_1 : i32, i32, i32
  }
  func.func @transform_1(%arg0: i32) -> (i32, i32, i32) {
    %c0_i32 = arith.constant 0 : i32
    %c0_i32_0 = arith.constant 0 : i32
    %c0_i32_1 = arith.constant 0 : i32
    %c0_i32_2 = arith.constant 0 : i32
    return %c0_i32, %c0_i32_0, %c0_i32_1 : i32, i32, i32
  }
  func.func @transform_2(%arg0: i32) -> (i32, i32, i32) {
    %c0_i32 = arith.constant 0 : i32
    %c0_i32_0 = arith.constant 0 : i32
    %c0_i32_1 = arith.constant 0 : i32
    %c0_i32_2 = arith.constant 0 : i32
    return %c0_i32, %c0_i32_0, %c0_i32_1 : i32, i32, i32
  }
  func.func @transform_3(%arg0: i32) -> (i32, i32, i32) {
    %c0_i32 = arith.constant 0 : i32
    %c0_i32_0 = arith.constant 0 : i32
    %c0_i32_1 = arith.constant 0 : i32
    %c0_i32_2 = arith.constant 0 : i32
    return %c0_i32, %c0_i32_0, %c0_i32_1 : i32, i32, i32
  }
  func.func @transform_4(%arg0: i32) -> (i32, i32) {
    %c0_i32 = arith.constant 0 : i32
    %c0_i32_0 = arith.constant 0 : i32
    %c0_i32_1 = arith.constant 0 : i32
    return %c0_i32, %c0_i32_0 : i32, i32
  }
}

module attributes {stable_mosaic.version = 11 : i64} {
  func.func @kernel(%arg0: i32, %arg1: memref<4x16x256xbf16, #tpu.memory_space<vmem>>, %arg2: memref<9x32x16xbf16, #tpu.memory_space<vmem>>, %arg3: memref<1x128x32xbf16, #tpu.memory_space<vmem>>, %arg4: memref<1x32x128xbf16, #tpu.memory_space<vmem>>, %arg5: memref<32x128xbf16, #tpu.memory_space<vmem>>) attributes {dimension_semantics = [#tpu.dimension_semantics<arbitrary>], iteration_bounds = array<i64: 1>, scalar_prefetch = 0 : i64, scratch_operands = 0 : i64, tpu.core_type = #tpu.core_type<tc>, window_params = [{pipeline_mode = #tpu.pipeline_mode<synchronous>, transform_indices = @transform_0, window_bounds = array<i64: 4, 16, 256>}, {pipeline_mode = #tpu.pipeline_mode<synchronous>, transform_indices = @transform_1, window_bounds = array<i64: 9, 32, 16>}, {pipeline_mode = #tpu.pipeline_mode<synchronous>, transform_indices = @transform_2, window_bounds = array<i64: 1, 128, 32>}, {pipeline_mode = #tpu.pipeline_mode<synchronous>, transform_indices = @transform_3, window_bounds = array<i64: 1, 32, 128>}, {pipeline_mode = #tpu.pipeline_mode<synchronous>, transform_indices = @transform_4, window_bounds = array<i64: 32, 128>}]} {
    %c0 = arith.constant 0 : index
    %c0_0 = arith.constant 0 : index
    %c0_1 = arith.constant 0 : index
    %0 = vector.load %arg1[%c0, %c0_0, %c0_1] : memref<4x16x256xbf16, #tpu.memory_space<vmem>>, vector<1x16x256xbf16>
    %1 = vector.shape_cast %0 : vector<1x16x256xbf16> to vector<16x256xbf16>
    %c1 = arith.constant 1 : index
    %c0_2 = arith.constant 0 : index
    %c0_3 = arith.constant 0 : index
    %2 = vector.load %arg1[%c1, %c0_2, %c0_3] : memref<4x16x256xbf16, #tpu.memory_space<vmem>>, vector<1x16x256xbf16>
    %3 = vector.shape_cast %2 : vector<1x16x256xbf16> to vector<16x256xbf16>
    %c2 = arith.constant 2 : index
    %c0_4 = arith.constant 0 : index
    %c0_5 = arith.constant 0 : index
    %4 = vector.load %arg1[%c2, %c0_4, %c0_5] : memref<4x16x256xbf16, #tpu.memory_space<vmem>>, vector<1x16x256xbf16>
    %5 = vector.shape_cast %4 : vector<1x16x256xbf16> to vector<16x256xbf16>
    %c3 = arith.constant 3 : index
    %c0_6 = arith.constant 0 : index
    %c0_7 = arith.constant 0 : index
    %6 = vector.load %arg1[%c3, %c0_6, %c0_7] : memref<4x16x256xbf16, #tpu.memory_space<vmem>>, vector<1x16x256xbf16>
    %7 = vector.shape_cast %6 : vector<1x16x256xbf16> to vector<16x256xbf16>
    %cst = arith.constant 0.000000e+00 : f32
    %8 = vector.broadcast %cst : f32 to vector<32x128xf32>
    %9 = vector.extract_strided_slice %1 {offsets = [0, 0], sizes = [16, 128], strides = [1, 1]} : vector<16x256xbf16> to vector<16x128xbf16>
    %c0_8 = arith.constant 0 : index
    %c0_9 = arith.constant 0 : index
    %c0_10 = arith.constant 0 : index
    %10 = vector.load %arg2[%c0_8, %c0_9, %c0_10] : memref<9x32x16xbf16, #tpu.memory_space<vmem>>, vector<1x32x16xbf16>
    %11 = vector.shape_cast %10 : vector<1x32x16xbf16> to vector<32x16xbf16>
    %cst_11 = arith.constant dense<0.000000e+00> : vector<32x128xf32>
    %12 = tpu.matmul %11, %9, %cst_11 {dimension_numbers = #tpu.dot_dimension_numbers<[1], [0], [0], [1], [0, 0, 1, 1], [], []>} : vector<32x16xbf16>, vector<16x128xbf16>, vector<32x128xf32> -> vector<32x128xf32>
    %13 = arith.addf %8, %12 : vector<32x128xf32>
    %14 = vector.extract_strided_slice %3 {offsets = [0, 0], sizes = [16, 128], strides = [1, 1]} : vector<16x256xbf16> to vector<16x128xbf16>
    %c1_12 = arith.constant 1 : index
    %c0_13 = arith.constant 0 : index
    %c0_14 = arith.constant 0 : index
    %15 = vector.load %arg2[%c1_12, %c0_13, %c0_14] : memref<9x32x16xbf16, #tpu.memory_space<vmem>>, vector<1x32x16xbf16>
    %16 = vector.shape_cast %15 : vector<1x32x16xbf16> to vector<32x16xbf16>
    %cst_15 = arith.constant dense<0.000000e+00> : vector<32x128xf32>
    %17 = tpu.matmul %16, %14, %cst_15 {dimension_numbers = #tpu.dot_dimension_numbers<[1], [0], [0], [1], [0, 0, 1, 1], [], []>} : vector<32x16xbf16>, vector<16x128xbf16>, vector<32x128xf32> -> vector<32x128xf32>
    %18 = arith.addf %13, %17 : vector<32x128xf32>
    %19 = vector.extract_strided_slice %1 {offsets = [0, 1], sizes = [16, 128], strides = [1, 1]} : vector<16x256xbf16> to vector<16x128xbf16>
    %c2_16 = arith.constant 2 : index
    %c0_17 = arith.constant 0 : index
    %c0_18 = arith.constant 0 : index
    %20 = vector.load %arg2[%c2_16, %c0_17, %c0_18] : memref<9x32x16xbf16, #tpu.memory_space<vmem>>, vector<1x32x16xbf16>
    %21 = vector.shape_cast %20 : vector<1x32x16xbf16> to vector<32x16xbf16>
    %cst_19 = arith.constant dense<0.000000e+00> : vector<32x128xf32>
    %22 = tpu.matmul %21, %19, %cst_19 {dimension_numbers = #tpu.dot_dimension_numbers<[1], [0], [0], [1], [0, 0, 1, 1], [], []>} : vector<32x16xbf16>, vector<16x128xbf16>, vector<32x128xf32> -> vector<32x128xf32>
    %23 = arith.addf %18, %22 : vector<32x128xf32>
    %24 = vector.extract_strided_slice %5 {offsets = [0, 0], sizes = [16, 128], strides = [1, 1]} : vector<16x256xbf16> to vector<16x128xbf16>
    %c3_20 = arith.constant 3 : index
    %c0_21 = arith.constant 0 : index
    %c0_22 = arith.constant 0 : index
    %25 = vector.load %arg2[%c3_20, %c0_21, %c0_22] : memref<9x32x16xbf16, #tpu.memory_space<vmem>>, vector<1x32x16xbf16>
    %26 = vector.shape_cast %25 : vector<1x32x16xbf16> to vector<32x16xbf16>
    %cst_23 = arith.constant dense<0.000000e+00> : vector<32x128xf32>
    %27 = tpu.matmul %26, %24, %cst_23 {dimension_numbers = #tpu.dot_dimension_numbers<[1], [0], [0], [1], [0, 0, 1, 1], [], []>} : vector<32x16xbf16>, vector<16x128xbf16>, vector<32x128xf32> -> vector<32x128xf32>
    %28 = arith.addf %23, %27 : vector<32x128xf32>
    %29 = vector.extract_strided_slice %7 {offsets = [0, 0], sizes = [16, 128], strides = [1, 1]} : vector<16x256xbf16> to vector<16x128xbf16>
    %c4 = arith.constant 4 : index
    %c0_24 = arith.constant 0 : index
    %c0_25 = arith.constant 0 : index
    %30 = vector.load %arg2[%c4, %c0_24, %c0_25] : memref<9x32x16xbf16, #tpu.memory_space<vmem>>, vector<1x32x16xbf16>
    %31 = vector.shape_cast %30 : vector<1x32x16xbf16> to vector<32x16xbf16>
    %cst_26 = arith.constant dense<0.000000e+00> : vector<32x128xf32>
    %32 = tpu.matmul %31, %29, %cst_26 {dimension_numbers = #tpu.dot_dimension_numbers<[1], [0], [0], [1], [0, 0, 1, 1], [], []>} : vector<32x16xbf16>, vector<16x128xbf16>, vector<32x128xf32> -> vector<32x128xf32>
    %33 = arith.addf %28, %32 : vector<32x128xf32>
    %34 = vector.extract_strided_slice %5 {offsets = [0, 1], sizes = [16, 128], strides = [1, 1]} : vector<16x256xbf16> to vector<16x128xbf16>
    %c5 = arith.constant 5 : index
    %c0_27 = arith.constant 0 : index
    %c0_28 = arith.constant 0 : index
    %35 = vector.load %arg2[%c5, %c0_27, %c0_28] : memref<9x32x16xbf16, #tpu.memory_space<vmem>>, vector<1x32x16xbf16>
    %36 = vector.shape_cast %35 : vector<1x32x16xbf16> to vector<32x16xbf16>
    %cst_29 = arith.constant dense<0.000000e+00> : vector<32x128xf32>
    %37 = tpu.matmul %36, %34, %cst_29 {dimension_numbers = #tpu.dot_dimension_numbers<[1], [0], [0], [1], [0, 0, 1, 1], [], []>} : vector<32x16xbf16>, vector<16x128xbf16>, vector<32x128xf32> -> vector<32x128xf32>
    %38 = arith.addf %33, %37 : vector<32x128xf32>
    %39 = vector.extract_strided_slice %1 {offsets = [0, 5], sizes = [16, 128], strides = [1, 1]} : vector<16x256xbf16> to vector<16x128xbf16>
    %c6 = arith.constant 6 : index
    %c0_30 = arith.constant 0 : index
    %c0_31 = arith.constant 0 : index
    %40 = vector.load %arg2[%c6, %c0_30, %c0_31] : memref<9x32x16xbf16, #tpu.memory_space<vmem>>, vector<1x32x16xbf16>
    %41 = vector.shape_cast %40 : vector<1x32x16xbf16> to vector<32x16xbf16>
    %cst_32 = arith.constant dense<0.000000e+00> : vector<32x128xf32>
    %42 = tpu.matmul %41, %39, %cst_32 {dimension_numbers = #tpu.dot_dimension_numbers<[1], [0], [0], [1], [0, 0, 1, 1], [], []>} : vector<32x16xbf16>, vector<16x128xbf16>, vector<32x128xf32> -> vector<32x128xf32>
    %43 = arith.addf %38, %42 : vector<32x128xf32>
    %44 = vector.extract_strided_slice %3 {offsets = [0, 5], sizes = [16, 128], strides = [1, 1]} : vector<16x256xbf16> to vector<16x128xbf16>
    %c7 = arith.constant 7 : index
    %c0_33 = arith.constant 0 : index
    %c0_34 = arith.constant 0 : index
    %45 = vector.load %arg2[%c7, %c0_33, %c0_34] : memref<9x32x16xbf16, #tpu.memory_space<vmem>>, vector<1x32x16xbf16>
    %46 = vector.shape_cast %45 : vector<1x32x16xbf16> to vector<32x16xbf16>
    %cst_35 = arith.constant dense<0.000000e+00> : vector<32x128xf32>
    %47 = tpu.matmul %46, %44, %cst_35 {dimension_numbers = #tpu.dot_dimension_numbers<[1], [0], [0], [1], [0, 0, 1, 1], [], []>} : vector<32x16xbf16>, vector<16x128xbf16>, vector<32x128xf32> -> vector<32x128xf32>
    %48 = arith.addf %43, %47 : vector<32x128xf32>
    %49 = vector.extract_strided_slice %1 {offsets = [0, 6], sizes = [16, 128], strides = [1, 1]} : vector<16x256xbf16> to vector<16x128xbf16>
    %c8 = arith.constant 8 : index
    %c0_36 = arith.constant 0 : index
    %c0_37 = arith.constant 0 : index
    %50 = vector.load %arg2[%c8, %c0_36, %c0_37] : memref<9x32x16xbf16, #tpu.memory_space<vmem>>, vector<1x32x16xbf16>
    %51 = vector.shape_cast %50 : vector<1x32x16xbf16> to vector<32x16xbf16>
    %cst_38 = arith.constant dense<0.000000e+00> : vector<32x128xf32>
    %52 = tpu.matmul %51, %49, %cst_38 {dimension_numbers = #tpu.dot_dimension_numbers<[1], [0], [0], [1], [0, 0, 1, 1], [], []>} : vector<32x16xbf16>, vector<16x128xbf16>, vector<32x128xf32> -> vector<32x128xf32>
    %53 = arith.addf %48, %52 : vector<32x128xf32>
    %c0_39 = arith.constant 0 : index
    %c0_40 = arith.constant 0 : index
    %c0_41 = arith.constant 0 : index
    %54 = vector.load %arg3[%c0_39, %c0_40, %c0_41] : memref<1x128x32xbf16, #tpu.memory_space<vmem>>, vector<1x128x32xbf16>
    %55 = vector.shape_cast %54 : vector<1x128x32xbf16> to vector<128x32xbf16>
    %56 = arith.truncf %53 : vector<32x128xf32> to vector<32x128xbf16>
    %cst_42 = arith.constant dense<0.000000e+00> : vector<128x128xf32>
    %57 = tpu.matmul %55, %56, %cst_42 {dimension_numbers = #tpu.dot_dimension_numbers<[1], [0], [0], [1], [0, 0, 1, 1], [], []>} : vector<128x32xbf16>, vector<32x128xbf16>, vector<128x128xf32> -> vector<128x128xf32>
    %cst_43 = arith.constant 0.000000e+00 : f32
    %58 = vector.broadcast %cst_43 : f32 to vector<128x128xf32>
    %59 = arith.maximumf %57, %58 : vector<128x128xf32>
    %c0_44 = arith.constant 0 : index
    %c0_45 = arith.constant 0 : index
    %c0_46 = arith.constant 0 : index
    %60 = vector.load %arg4[%c0_44, %c0_45, %c0_46] : memref<1x32x128xbf16, #tpu.memory_space<vmem>>, vector<1x32x128xbf16>
    %61 = vector.shape_cast %60 : vector<1x32x128xbf16> to vector<32x128xbf16>
    %62 = arith.truncf %59 : vector<128x128xf32> to vector<128x128xbf16>
    %cst_47 = arith.constant dense<0.000000e+00> : vector<32x128xf32>
    %63 = tpu.matmul %61, %62, %cst_47 {dimension_numbers = #tpu.dot_dimension_numbers<[1], [0], [0], [1], [0, 0, 1, 1], [], []>} : vector<32x128xbf16>, vector<128x128xbf16>, vector<32x128xf32> -> vector<32x128xf32>
    %64 = arith.addf %53, %63 : vector<32x128xf32>
    %65 = arith.truncf %64 : vector<32x128xf32> to vector<32x128xbf16>
    %c0_48 = arith.constant 0 : index
    %c0_49 = arith.constant 0 : index
    %66 = vector.load %arg5[%c0_48, %c0_49] : memref<32x128xbf16, #tpu.memory_space<vmem>>, vector<32x128xbf16>
    tpu.vector_store %arg5[%c0_48, %c0_49], %65 {strides = array<i32>} : memref<32x128xbf16, #tpu.memory_space<vmem>>, vector<32x128xbf16>,
    return
  }
  func.func @transform_0(%arg0: i32) -> (i32, i32, i32) {
    %c0_i32 = arith.constant 0 : i32
    %c0_i32_0 = arith.constant 0 : i32
    %c0_i32_1 = arith.constant 0 : i32
    %c0_i32_2 = arith.constant 0 : i32
    return %c0_i32, %c0_i32_0, %c0_i32_1 : i32, i32, i32
  }
  func.func @transform_1(%arg0: i32) -> (i32, i32, i32) {
    %c0_i32 = arith.constant 0 : i32
    %c0_i32_0 = arith.constant 0 : i32
    %c0_i32_1 = arith.constant 0 : i32
    %c0_i32_2 = arith.constant 0 : i32
    return %c0_i32, %c0_i32_0, %c0_i32_1 : i32, i32, i32
  }
  func.func @transform_2(%arg0: i32) -> (i32, i32, i32) {
    %c0_i32 = arith.constant 0 : i32
    %c0_i32_0 = arith.constant 0 : i32
    %c0_i32_1 = arith.constant 0 : i32
    %c0_i32_2 = arith.constant 0 : i32
    return %c0_i32, %c0_i32_0, %c0_i32_1 : i32, i32, i32
  }
  func.func @transform_3(%arg0: i32) -> (i32, i32, i32) {
    %c0_i32 = arith.constant 0 : i32
    %c0_i32_0 = arith.constant 0 : i32
    %c0_i32_1 = arith.constant 0 : i32
    %c0_i32_2 = arith.constant 0 : i32
    return %c0_i32, %c0_i32_0, %c0_i32_1 : i32, i32, i32
  }
  func.func @transform_4(%arg0: i32) -> (i32, i32) {
    %c0_i32 = arith.constant 0 : i32
    %c0_i32_0 = arith.constant 0 : i32
    %c0_i32_1 = arith.constant 0 : i32
    return %c0_i32, %c0_i32_0 : i32, i32
  }
}

module attributes {stable_mosaic.version = 11 : i64} {
  func.func @kernel(%arg0: i32, %arg1: memref<4x32x256xbf16, #tpu.memory_space<vmem>>, %arg2: memref<9x64x32xbf16, #tpu.memory_space<vmem>>, %arg3: memref<1x256x64xbf16, #tpu.memory_space<vmem>>, %arg4: memref<1x64x256xbf16, #tpu.memory_space<vmem>>, %arg5: memref<64x128xbf16, #tpu.memory_space<vmem>>) attributes {dimension_semantics = [#tpu.dimension_semantics<arbitrary>], iteration_bounds = array<i64: 1>, scalar_prefetch = 0 : i64, scratch_operands = 0 : i64, tpu.core_type = #tpu.core_type<tc>, window_params = [{pipeline_mode = #tpu.pipeline_mode<synchronous>, transform_indices = @transform_0, window_bounds = array<i64: 4, 32, 256>}, {pipeline_mode = #tpu.pipeline_mode<synchronous>, transform_indices = @transform_1, window_bounds = array<i64: 9, 64, 32>}, {pipeline_mode = #tpu.pipeline_mode<synchronous>, transform_indices = @transform_2, window_bounds = array<i64: 1, 256, 64>}, {pipeline_mode = #tpu.pipeline_mode<synchronous>, transform_indices = @transform_3, window_bounds = array<i64: 1, 64, 256>}, {pipeline_mode = #tpu.pipeline_mode<synchronous>, transform_indices = @transform_4, window_bounds = array<i64: 64, 128>}]} {
    %c0 = arith.constant 0 : index
    %c0_0 = arith.constant 0 : index
    %c0_1 = arith.constant 0 : index
    %0 = vector.load %arg1[%c0, %c0_0, %c0_1] : memref<4x32x256xbf16, #tpu.memory_space<vmem>>, vector<1x32x256xbf16>
    %1 = vector.shape_cast %0 : vector<1x32x256xbf16> to vector<32x256xbf16>
    %c1 = arith.constant 1 : index
    %c0_2 = arith.constant 0 : index
    %c0_3 = arith.constant 0 : index
    %2 = vector.load %arg1[%c1, %c0_2, %c0_3] : memref<4x32x256xbf16, #tpu.memory_space<vmem>>, vector<1x32x256xbf16>
    %3 = vector.shape_cast %2 : vector<1x32x256xbf16> to vector<32x256xbf16>
    %c2 = arith.constant 2 : index
    %c0_4 = arith.constant 0 : index
    %c0_5 = arith.constant 0 : index
    %4 = vector.load %arg1[%c2, %c0_4, %c0_5] : memref<4x32x256xbf16, #tpu.memory_space<vmem>>, vector<1x32x256xbf16>
    %5 = vector.shape_cast %4 : vector<1x32x256xbf16> to vector<32x256xbf16>
    %c3 = arith.constant 3 : index
    %c0_6 = arith.constant 0 : index
    %c0_7 = arith.constant 0 : index
    %6 = vector.load %arg1[%c3, %c0_6, %c0_7] : memref<4x32x256xbf16, #tpu.memory_space<vmem>>, vector<1x32x256xbf16>
    %7 = vector.shape_cast %6 : vector<1x32x256xbf16> to vector<32x256xbf16>
    %cst = arith.constant 0.000000e+00 : f32
    %8 = vector.broadcast %cst : f32 to vector<64x128xf32>
    %9 = vector.extract_strided_slice %1 {offsets = [0, 0], sizes = [32, 128], strides = [1, 1]} : vector<32x256xbf16> to vector<32x128xbf16>
    %c0_8 = arith.constant 0 : index
    %c0_9 = arith.constant 0 : index
    %c0_10 = arith.constant 0 : index
    %10 = vector.load %arg2[%c0_8, %c0_9, %c0_10] : memref<9x64x32xbf16, #tpu.memory_space<vmem>>, vector<1x64x32xbf16>
    %11 = vector.shape_cast %10 : vector<1x64x32xbf16> to vector<64x32xbf16>
    %cst_11 = arith.constant dense<0.000000e+00> : vector<64x128xf32>
    %12 = tpu.matmul %11, %9, %cst_11 {dimension_numbers = #tpu.dot_dimension_numbers<[1], [0], [0], [1], [0, 0, 1, 1], [], []>} : vector<64x32xbf16>, vector<32x128xbf16>, vector<64x128xf32> -> vector<64x128xf32>
    %13 = arith.addf %8, %12 : vector<64x128xf32>
    %14 = vector.extract_strided_slice %3 {offsets = [0, 0], sizes = [32, 128], strides = [1, 1]} : vector<32x256xbf16> to vector<32x128xbf16>
    %c1_12 = arith.constant 1 : index
    %c0_13 = arith.constant 0 : index
    %c0_14 = arith.constant 0 : index
    %15 = vector.load %arg2[%c1_12, %c0_13, %c0_14] : memref<9x64x32xbf16, #tpu.memory_space<vmem>>, vector<1x64x32xbf16>
    %16 = vector.shape_cast %15 : vector<1x64x32xbf16> to vector<64x32xbf16>
    %cst_15 = arith.constant dense<0.000000e+00> : vector<64x128xf32>
    %17 = tpu.matmul %16, %14, %cst_15 {dimension_numbers = #tpu.dot_dimension_numbers<[1], [0], [0], [1], [0, 0, 1, 1], [], []>} : vector<64x32xbf16>, vector<32x128xbf16>, vector<64x128xf32> -> vector<64x128xf32>
    %18 = arith.addf %13, %17 : vector<64x128xf32>
    %19 = vector.extract_strided_slice %1 {offsets = [0, 1], sizes = [32, 128], strides = [1, 1]} : vector<32x256xbf16> to vector<32x128xbf16>
    %c2_16 = arith.constant 2 : index
    %c0_17 = arith.constant 0 : index
    %c0_18 = arith.constant 0 : index
    %20 = vector.load %arg2[%c2_16, %c0_17, %c0_18] : memref<9x64x32xbf16, #tpu.memory_space<vmem>>, vector<1x64x32xbf16>
    %21 = vector.shape_cast %20 : vector<1x64x32xbf16> to vector<64x32xbf16>
    %cst_19 = arith.constant dense<0.000000e+00> : vector<64x128xf32>
    %22 = tpu.matmul %21, %19, %cst_19 {dimension_numbers = #tpu.dot_dimension_numbers<[1], [0], [0], [1], [0, 0, 1, 1], [], []>} : vector<64x32xbf16>, vector<32x128xbf16>, vector<64x128xf32> -> vector<64x128xf32>
    %23 = arith.addf %18, %22 : vector<64x128xf32>
    %24 = vector.extract_strided_slice %5 {offsets = [0, 0], sizes = [32, 128], strides = [1, 1]} : vector<32x256xbf16> to vector<32x128xbf16>
    %c3_20 = arith.constant 3 : index
    %c0_21 = arith.constant 0 : index
    %c0_22 = arith.constant 0 : index
    %25 = vector.load %arg2[%c3_20, %c0_21, %c0_22] : memref<9x64x32xbf16, #tpu.memory_space<vmem>>, vector<1x64x32xbf16>
    %26 = vector.shape_cast %25 : vector<1x64x32xbf16> to vector<64x32xbf16>
    %cst_23 = arith.constant dense<0.000000e+00> : vector<64x128xf32>
    %27 = tpu.matmul %26, %24, %cst_23 {dimension_numbers = #tpu.dot_dimension_numbers<[1], [0], [0], [1], [0, 0, 1, 1], [], []>} : vector<64x32xbf16>, vector<32x128xbf16>, vector<64x128xf32> -> vector<64x128xf32>
    %28 = arith.addf %23, %27 : vector<64x128xf32>
    %29 = vector.extract_strided_slice %7 {offsets = [0, 0], sizes = [32, 128], strides = [1, 1]} : vector<32x256xbf16> to vector<32x128xbf16>
    %c4 = arith.constant 4 : index
    %c0_24 = arith.constant 0 : index
    %c0_25 = arith.constant 0 : index
    %30 = vector.load %arg2[%c4, %c0_24, %c0_25] : memref<9x64x32xbf16, #tpu.memory_space<vmem>>, vector<1x64x32xbf16>
    %31 = vector.shape_cast %30 : vector<1x64x32xbf16> to vector<64x32xbf16>
    %cst_26 = arith.constant dense<0.000000e+00> : vector<64x128xf32>
    %32 = tpu.matmul %31, %29, %cst_26 {dimension_numbers = #tpu.dot_dimension_numbers<[1], [0], [0], [1], [0, 0, 1, 1], [], []>} : vector<64x32xbf16>, vector<32x128xbf16>, vector<64x128xf32> -> vector<64x128xf32>
    %33 = arith.addf %28, %32 : vector<64x128xf32>
    %34 = vector.extract_strided_slice %5 {offsets = [0, 1], sizes = [32, 128], strides = [1, 1]} : vector<32x256xbf16> to vector<32x128xbf16>
    %c5 = arith.constant 5 : index
    %c0_27 = arith.constant 0 : index
    %c0_28 = arith.constant 0 : index
    %35 = vector.load %arg2[%c5, %c0_27, %c0_28] : memref<9x64x32xbf16, #tpu.memory_space<vmem>>, vector<1x64x32xbf16>
    %36 = vector.shape_cast %35 : vector<1x64x32xbf16> to vector<64x32xbf16>
    %cst_29 = arith.constant dense<0.000000e+00> : vector<64x128xf32>
    %37 = tpu.matmul %36, %34, %cst_29 {dimension_numbers = #tpu.dot_dimension_numbers<[1], [0], [0], [1], [0, 0, 1, 1], [], []>} : vector<64x32xbf16>, vector<32x128xbf16>, vector<64x128xf32> -> vector<64x128xf32>
    %38 = arith.addf %33, %37 : vector<64x128xf32>
    %39 = vector.extract_strided_slice %1 {offsets = [0, 3], sizes = [32, 128], strides = [1, 1]} : vector<32x256xbf16> to vector<32x128xbf16>
    %c6 = arith.constant 6 : index
    %c0_30 = arith.constant 0 : index
    %c0_31 = arith.constant 0 : index
    %40 = vector.load %arg2[%c6, %c0_30, %c0_31] : memref<9x64x32xbf16, #tpu.memory_space<vmem>>, vector<1x64x32xbf16>
    %41 = vector.shape_cast %40 : vector<1x64x32xbf16> to vector<64x32xbf16>
    %cst_32 = arith.constant dense<0.000000e+00> : vector<64x128xf32>
    %42 = tpu.matmul %41, %39, %cst_32 {dimension_numbers = #tpu.dot_dimension_numbers<[1], [0], [0], [1], [0, 0, 1, 1], [], []>} : vector<64x32xbf16>, vector<32x128xbf16>, vector<64x128xf32> -> vector<64x128xf32>
    %43 = arith.addf %38, %42 : vector<64x128xf32>
    %44 = vector.extract_strided_slice %3 {offsets = [0, 3], sizes = [32, 128], strides = [1, 1]} : vector<32x256xbf16> to vector<32x128xbf16>
    %c7 = arith.constant 7 : index
    %c0_33 = arith.constant 0 : index
    %c0_34 = arith.constant 0 : index
    %45 = vector.load %arg2[%c7, %c0_33, %c0_34] : memref<9x64x32xbf16, #tpu.memory_space<vmem>>, vector<1x64x32xbf16>
    %46 = vector.shape_cast %45 : vector<1x64x32xbf16> to vector<64x32xbf16>
    %cst_35 = arith.constant dense<0.000000e+00> : vector<64x128xf32>
    %47 = tpu.matmul %46, %44, %cst_35 {dimension_numbers = #tpu.dot_dimension_numbers<[1], [0], [0], [1], [0, 0, 1, 1], [], []>} : vector<64x32xbf16>, vector<32x128xbf16>, vector<64x128xf32> -> vector<64x128xf32>
    %48 = arith.addf %43, %47 : vector<64x128xf32>
    %49 = vector.extract_strided_slice %1 {offsets = [0, 4], sizes = [32, 128], strides = [1, 1]} : vector<32x256xbf16> to vector<32x128xbf16>
    %c8 = arith.constant 8 : index
    %c0_36 = arith.constant 0 : index
    %c0_37 = arith.constant 0 : index
    %50 = vector.load %arg2[%c8, %c0_36, %c0_37] : memref<9x64x32xbf16, #tpu.memory_space<vmem>>, vector<1x64x32xbf16>
    %51 = vector.shape_cast %50 : vector<1x64x32xbf16> to vector<64x32xbf16>
    %cst_38 = arith.constant dense<0.000000e+00> : vector<64x128xf32>
    %52 = tpu.matmul %51, %49, %cst_38 {dimension_numbers = #tpu.dot_dimension_numbers<[1], [0], [0], [1], [0, 0, 1, 1], [], []>} : vector<64x32xbf16>, vector<32x128xbf16>, vector<64x128xf32> -> vector<64x128xf32>
    %53 = arith.addf %48, %52 : vector<64x128xf32>
    %c0_39 = arith.constant 0 : index
    %c0_40 = arith.constant 0 : index
    %c0_41 = arith.constant 0 : index
    %54 = vector.load %arg3[%c0_39, %c0_40, %c0_41] : memref<1x256x64xbf16, #tpu.memory_space<vmem>>, vector<1x256x64xbf16>
    %55 = vector.shape_cast %54 : vector<1x256x64xbf16> to vector<256x64xbf16>
    %56 = arith.truncf %53 : vector<64x128xf32> to vector<64x128xbf16>
    %cst_42 = arith.constant dense<0.000000e+00> : vector<256x128xf32>
    %57 = tpu.matmul %55, %56, %cst_42 {dimension_numbers = #tpu.dot_dimension_numbers<[1], [0], [0], [1], [0, 0, 1, 1], [], []>} : vector<256x64xbf16>, vector<64x128xbf16>, vector<256x128xf32> -> vector<256x128xf32>
    %cst_43 = arith.constant 0.000000e+00 : f32
    %58 = vector.broadcast %cst_43 : f32 to vector<256x128xf32>
    %59 = arith.maximumf %57, %58 : vector<256x128xf32>
    %c0_44 = arith.constant 0 : index
    %c0_45 = arith.constant 0 : index
    %c0_46 = arith.constant 0 : index
    %60 = vector.load %arg4[%c0_44, %c0_45, %c0_46] : memref<1x64x256xbf16, #tpu.memory_space<vmem>>, vector<1x64x256xbf16>
    %61 = vector.shape_cast %60 : vector<1x64x256xbf16> to vector<64x256xbf16>
    %62 = arith.truncf %59 : vector<256x128xf32> to vector<256x128xbf16>
    %cst_47 = arith.constant dense<0.000000e+00> : vector<64x128xf32>
    %63 = tpu.matmul %61, %62, %cst_47 {dimension_numbers = #tpu.dot_dimension_numbers<[1], [0], [0], [1], [0, 0, 1, 1], [], []>} : vector<64x256xbf16>, vector<256x128xbf16>, vector<64x128xf32> -> vector<64x128xf32>
    %64 = arith.addf %53, %63 : vector<64x128xf32>
    %65 = arith.truncf %64 : vector<64x128xf32> to vector<64x128xbf16>
    %c0_48 = arith.constant 0 : index
    %c0_49 = arith.constant 0 : index
    %66 = vector.load %arg5[%c0_48, %c0_49] : memref<64x128xbf16, #tpu.memory_space<vmem>>, vector<64x128xbf16>
    tpu.vector_store %arg5[%c0_48, %c0_49], %65 {strides = array<i32>} : memref<64x128xbf16, #tpu.memory_space<vmem>>, vector<64x128xbf16>,
    return
  }
  func.func @transform_0(%arg0: i32) -> (i32, i32, i32) {
    %c0_i32 = arith.constant 0 : i32
    %c0_i32_0 = arith.constant 0 : i32
    %c0_i32_1 = arith.constant 0 : i32
    %c0_i32_2 = arith.constant 0 : i32
    return %c0_i32, %c0_i32_0, %c0_i32_1 : i32, i32, i32
  }
  func.func @transform_1(%arg0: i32) -> (i32, i32, i32) {
    %c0_i32 = arith.constant 0 : i32
    %c0_i32_0 = arith.constant 0 : i32
    %c0_i32_1 = arith.constant 0 : i32
    %c0_i32_2 = arith.constant 0 : i32
    return %c0_i32, %c0_i32_0, %c0_i32_1 : i32, i32, i32
  }
  func.func @transform_2(%arg0: i32) -> (i32, i32, i32) {
    %c0_i32 = arith.constant 0 : i32
    %c0_i32_0 = arith.constant 0 : i32
    %c0_i32_1 = arith.constant 0 : i32
    %c0_i32_2 = arith.constant 0 : i32
    return %c0_i32, %c0_i32_0, %c0_i32_1 : i32, i32, i32
  }
  func.func @transform_3(%arg0: i32) -> (i32, i32, i32) {
    %c0_i32 = arith.constant 0 : i32
    %c0_i32_0 = arith.constant 0 : i32
    %c0_i32_1 = arith.constant 0 : i32
    %c0_i32_2 = arith.constant 0 : i32
    return %c0_i32, %c0_i32_0, %c0_i32_1 : i32, i32, i32
  }
  func.func @transform_4(%arg0: i32) -> (i32, i32) {
    %c0_i32 = arith.constant 0 : i32
    %c0_i32_0 = arith.constant 0 : i32
    %c0_i32_1 = arith.constant 0 : i32
    return %c0_i32, %c0_i32_0 : i32, i32
  }
}

</mosaic_0001>

<bundles_post_ra>
// kernel: _lambda_.4
= control target key start
LH: loop header
LB: loop body
LE: loop exit
PB: predicated region body
PF: predicated region fallthrough
CT: control target
= control target key end

     0   :  { %vm52_vm0 = vcmask 1043456   ;;  %v333_v2 = vmov 0   ;;  %vm45_vm1 = vcmask 64512   ;;  %vm196_vm2 = vcmask 261120   ;;  %s391_s0 = inlined_call_operand.vmem [shape: bf16[8,512], index: 0, kind: input, shape index: {}]   ;;  %s392_s1 = inlined_call_operand.vmem [shape: bf16[1,32,8], index: 1, kind: input, shape index: {}]   ;;  %s393_s2 = inlined_call_operand.vmem [shape: bf16[1,8,32], index: 2, kind: input, shape index: {}]   ;;  %s394_s3 = inlined_call_operand.vmem [shape: bf16[8,512], index: 3, kind: output, shape index: {}]  }
   0x1   :  { %v357_v0 = vld [vmem:[%s391_s0] sm:$0xff]  ;;  %v362_v1 = vld [vmem:[%s391_s0 + $0x8] sm:$0xff]  ;;  %97 = vmatprep.mubr.bf16.mxu0 %v333_v2  ;;  %150 = vmatprep.mubr.bf16.mxu1 %v333_v2 }
   0x2   :  { %v311_v3 = vcombine.high %v357_v0, %v357_v0  ;;  %v313_v4 = vcombine.high %v362_v1, %v362_v1  ;;  %v310_v5 = vcombine.low %v357_v0, %v357_v0  ;;  %v312_v6 = vcombine.low %v362_v1, %v362_v1  ;;  %v331_v9 = vld [vmem:[%s392_s1] sm:$0xff]   ;;  %v332_v10 = vld [vmem:[%s392_s1 + $0x8] sm:$0xff]  }
   0x3   :  { %v187_v51 = vld [vmem:[%s393_s2] sm:$0xf]  ;;  %v17_v52 = vunpack.c.l.bf16 %v357_v0  ;;  %v19_v53 = vunpack.c.l.bf16 %v362_v1  ;;  %v18_v54 = vunpack.c.h.bf16 %v357_v0  ;;  %v20_v55 = vunpack.c.h.bf16 %v362_v1 }
   0x4   :  { %314 = vmatprep.subr.msk.bf16.mxu0 %vm52_vm0, %v311_v3  ;;  %317 = vmatprep.subr.msk.bf16.mxu1 %vm52_vm0, %v313_v4  ;;  %v54_v7 = vsel %vm52_vm0, %v310_v5, 0  ;;  %v60_v8 = vsel %vm52_vm0, %v312_v6, 0 }
   0x5   :  { %66 = vmatpush1.bf16.msra.mxu0 %v54_v7  ;;  %119 = vmatpush1.bf16.msra.mxu1 %v60_v8 }
   0x8   :  { %315 = vmatmul.mubr.msk.bf16.vlgmr.msra.gmra.mrb[0].mxu0 %vm45_vm1, %v331_v9  ;;  %318 = vmatmul.mubr.msk.bf16.vlgmr.msra.gmra.mrb[0].mxu1 %vm45_vm1, %v331_v9 }
   0x9   :  { %107 = vmatprep.mubr.bf16.mxu0 %v333_v2  ;;  %160 = vmatprep.mubr.bf16.mxu1 %v333_v2 }
  0x10   :  { %316 = vmatmul.mubr.msk.bf16.gmra.mrb[4].mxu0 %vm45_vm1, %v332_v10  ;;  %319 = vmatmul.mubr.msk.bf16.gmra.mrb[4].mxu1 %vm45_vm1, %v332_v10 }
  0x11   :  { %232 = vmatprep.mubr.bf16.mxu0 %v333_v2  ;;  %273 = vmatprep.mubr.bf16.mxu1 %v333_v2 }
  0xdb   :  { %v99_v11 = vpop.f32.mrb[0].mxu0  ;;  %v152_v12 = vpop.f32.mrb[0].mxu1 }
  0xdc   :  { %v101_v13 = vpop.f32.mrb[1].mxu0  ;;  %v154_v14 = vpop.f32.mrb[1].mxu1  ;;  %v171_v17 = vmax.f32 %v99_v11, 0.0  ;;  %v173_v18 = vmax.f32 %v152_v12, 0.0 }
  0xdd   :  { %v103_v15 = vpop.f32.mrb[2].mxu0  ;;  %v156_v16 = vpop.f32.mrb[2].mxu1  ;;  %v172_v23 = vmax.f32 %v101_v13, 0.0  ;;  %v174_v24 = vmax.f32 %v154_v14, 0.0 }
  0xde   :  { %v175_v19 = vmax.f32 %v103_v15, 0.0  ;;  %v177_v20 = vmax.f32 %v156_v16, 0.0  ;;  %v105_v21 = vpop.f32.mrb[3].mxu0  ;;  %v158_v22 = vpop.f32.mrb[3].mxu1 }
  0xdf   :  { %v176_v25 = vmax.f32 %v105_v21, 0.0  ;;  %v178_v26 = vmax.f32 %v158_v22, 0.0 }
  0xe0   :  { %v188_v27 = vpack.c.bf16 %v175_v19, %v171_v17  ;;  %v190_v28 = vpack.c.bf16 %v177_v20, %v173_v18 }
  0xe1   :  { %v189_v29 = vpack.c.bf16 %v176_v25, %v172_v23  ;;  %v191_v30 = vpack.c.bf16 %v178_v26, %v174_v24 }
  0xe3   :  { %v109_v31 = vpop.f32.mrb[4].mxu0  ;;  %v162_v32 = vpop.f32.mrb[4].mxu1  ;;  %200 = vmatprep.subr.bf16.mxu0 %v189_v29  ;;  %241 = vmatprep.subr.bf16.mxu1 %v191_v30 }
  0xe4   :  { %v111_v33 = vpop.f32.mrb[5].mxu0  ;;  %v164_v34 = vpop.f32.mrb[5].mxu1  ;;  %201 = vmatpush1.bf16.msra.mxu0 %v188_v27  ;;  %242 = vmatpush1.bf16.msra.mxu1 %v190_v28  ;;  %v179_v37 = vmax.f32 %v109_v31, 0.0  ;;  %v181_v38 = vmax.f32 %v162_v32, 0.0 }
  0xe5   :  { %v113_v35 = vpop.f32.mrb[6].mxu0  ;;  %v166_v36 = vpop.f32.mrb[6].mxu1  ;;  %v180_v43 = vmax.f32 %v111_v33, 0.0  ;;  %v182_v44 = vmax.f32 %v164_v34, 0.0 }
  0xe6   :  { %v183_v39 = vmax.f32 %v113_v35, 0.0  ;;  %v185_v40 = vmax.f32 %v166_v36, 0.0  ;;  %v115_v41 = vpop.f32.mrb[7].mxu0  ;;  %v168_v42 = vpop.f32.mrb[7].mxu1 }
  0xe7   :  { %v184_v45 = vmax.f32 %v115_v41, 0.0  ;;  %v186_v46 = vmax.f32 %v168_v42, 0.0 }
  0xe8   :  { %v192_v47 = vpack.c.bf16 %v183_v39, %v179_v37  ;;  %v194_v48 = vpack.c.bf16 %v185_v40, %v181_v38 }
  0xe9   :  { %v193_v49 = vpack.c.bf16 %v184_v45, %v180_v43  ;;  %v195_v50 = vpack.c.bf16 %v186_v46, %v182_v44 }
  0xeb   :  { %202 = vmatprep.subr.bf16.mxu0 %v193_v49  ;;  %243 = vmatprep.subr.bf16.mxu1 %v195_v50 }
  0xec   :  { %203 = vmatpush1.bf16.msra.mxu0 %v192_v47  ;;  %244 = vmatpush1.bf16.msra.mxu1 %v194_v48 }
  0xef   :  { %320 = vmatmul.mubr.msk.bf16.vlgmr.msra.gmra.mrb[8].mxu0 %vm196_vm2, %v187_v51  ;;  %321 = vmatmul.mubr.msk.bf16.vlgmr.msra.gmra.mrb[8].mxu1 %vm196_vm2, %v187_v51 }
 0x1c2   :  { %v234_v56 = vpop.f32.mrb[8].mxu0  ;;  %v275_v57 = vpop.f32.mrb[8].mxu1 }
 0x1c3   :  { %v282_v58 = vadd.f32 %v234_v56, %v17_v52  ;;  %v284_v59 = vadd.f32 %v275_v57, %v19_v53  ;;  %v236_v60 = vpop.f32.mrb[9].mxu0  ;;  %v277_v61 = vpop.f32.mrb[9].mxu1 }
 0x1c4   :  { %v283_v62 = vadd.f32 %v236_v60, %v18_v54  ;;  %v285_v63 = vadd.f32 %v277_v61, %v20_v55  ;;  %v238_v2 = vpop.f32.mrb[10].mxu0  ;;  %v279_v3 = vpop.f32.mrb[10].mxu1 }
 0x1c5   :  { %v239_v4 = vpop.f32.mrb[11].mxu0  ;;  %v280_v5 = vpop.f32.mrb[11].mxu1 }
 0x1c6   :  { %v324_v6 = vpack.c.bf16 %v283_v62, %v282_v58  ;;  %v325_v7 = vpack.c.bf16 %v285_v63, %v284_v59 }
 0x1c8   :  { %302 = vst [vmem:[%s394_s3] sm:$0xff] %v324_v6  ;;  %303 = vst [vmem:[%s394_s3 + $0x8] sm:$0xff] %v325_v7 }

// kernel: _lambda_.5
= control target key start
LH: loop header
LB: loop body
LE: loop exit
PB: predicated region body
PF: predicated region fallthrough
CT: control target
= control target key end

     0   :  { %v1019_v2 = vmov 0   ;;  %s1020_s21 = smov 127   ;;  %vm47_vm0 = vcmask 1043456   ;;  %s1021_s26 = smov 119   ;;  %vm43_vm1 = vcmask 64512   ;;  %vm176_vm2 = vcmask 1039360   ;;  %s1182_s0 = inlined_call_operand.vmem [shape: bf16[4,8,384], index: 0, kind: input, shape index: {}]   ;;  %s1183_s1 = inlined_call_operand.vmem [shape: bf16[9,16,8], index: 1, kind: input, shape index: {}]   ;;  %s1184_s2 = inlined_call_operand.vmem [shape: bf16[1,64,16], index: 2, kind: input, shape index: {}]   ;;  %s1185_s3 = inlined_call_operand.vmem [shape: bf16[1,16,64], index: 3, kind: input, shape index: {}]   ;;  %s1186_s4 = inlined_call_operand.vmem [shape: bf16[16,256], index: 4, kind: output, shape index: {}]  }
   0x1   :  { %v18_v0 = vld [vmem:[%s1182_s0] sm:$0xff]  ;;  %v995_v1 = vld [vmem:[%s1182_s0 + $0x8] ss:$0 sps:$4 sm:$0xff]   ;;  %220 = vmatprep.mubr.bf16.mxu0 %v1019_v2  ;;  %86 = vmatprep.mubr.bf16.mxu1 %v1019_v2  ;;  %v887_v4 = vld [vmem:[%s1182_s0 + $0x18] sm:$0xff]  ;;  %s1022_s29 = smov 118   ;;  %vm462_vm3 = vcmask 973824  }
   0x2   :  { %v898_v3 = vcombine.low %v18_v0, %v18_v0  ;;  %174 = vrot.lane.b32.xlu1 %v995_v1, %s1020_s21  ;;  %v911_v5 = vcombine.low %v887_v4, %v887_v4  ;;  %v885_v6 = vld [vmem:[%s1182_s0 + $0xc] sm:$0xff]  ;;  %v899_v7 = vcombine.high %v18_v0, %v18_v0  ;;  %v998_v9 = vld [vmem:[%s1182_s0 + $0x20] ss:$0 sps:$4 sm:$0xff]   ;;  %v912_v10 = vcombine.high %v887_v4, %v887_v4  ;;  %v1001_v12 = vld [vmem:[%s1182_s0 + $0x14] ss:$0 sps:$4 sm:$0xff]  }
   0x3   :  { %v894_v8 = vcombine.high %v885_v6, %v885_v6  ;;  %v893_v11 = vcombine.low %v885_v6, %v885_v6  ;;  %v1009_v14 = vld [vmem:[%s1183_s1 + $0x8] sm:$0xff]   ;;  %v1011_v16 = vld [vmem:[%s1183_s1] sm:$0xff]   ;;  %v1003_v24 = vld [vmem:[%s1183_s1 + $0x10] sm:$0xff]   ;;  %vm610_vm4 = vcmask 965632   ;;  %vm699_vm5 = vcmask 130048  }
   0x4   :  { %170 = vrot.lane.b32.xlu0 %v898_v3, %s1020_s21  ;;  %v111_v15 = vsel %vm47_vm0, %v898_v3, 0  ;;  %v889_v22 = vld [vmem:[%s1182_s0 + $0x24] sm:$0xff]  ;;  %v252_v25 = vsel %vm47_vm0, %v911_v5, 0  ;;  %v1004_v29 = vld [vmem:[%s1183_s1 + $0x18] sm:$0xff]   ;;  %v1010_v50 = vld [vmem:[%s1183_s1 + $0x30] sm:$0xff]   ;;  %vm816_vm6 = vcmask 523264  }
   0x5   :  { %895 = vmatprep.subr.msk.bf16.mxu1 %vm47_vm0, %v894_v8  ;;  %v49_v13 = vsel %vm47_vm0, %v893_v11, 0  ;;  %v919_v26 = vcombine.high %v889_v22, %v889_v22  ;;  %v918_v28 = vcombine.low %v889_v22, %v889_v22  ;;  %v1007_v36 = vld [vmem:[%s1183_s1 + $0x20] sm:$0xff]   ;;  %v1008_v43 = vld [vmem:[%s1183_s1 + $0x28] sm:$0xff]   ;;  %v1012_v56 = vld [vmem:[%s1183_s1 + $0x38] sm:$0xff]  }
   0x6   :  { %384 = vrot.lane.b32.xlu1 %v911_v5, %s1020_s21  ;;  %55 = vmatpush1.bf16.msra.mxu1 %v49_v13  ;;  %v1013_v58 = vld [vmem:[%s1183_s1 + $0x40] sm:$0xff]   ;;  %v1017_v13 = vld [vmem:[%s1184_s2 + $0x18] sm:$0xff]  }
   0x7   :  { %900 = vmatprep.subr.msk.bf16.mxu1 %vm47_vm0, %v899_v7  ;;  %v321_v32 = vsel %vm47_vm0, %v918_v28, 0 }
   0x8   :  { %172 = vrot.lane.b32.xlu0 %v899_v7, %s1020_s21 }
   0x9   :  { %896 = vmatmul.mubr.msk.bf16.vlgmr.msra.gmra.mrb[0].mxu1 %vm43_vm1, %v1009_v14 }
   0xa   :  { %388 = vrot.lane.b32.xlu1 %v998_v9, %s1020_s21  ;;  %148 = vmatprep.mubr.bf16.mxu1 %v1019_v2 }
   0xb   :  { %117 = vmatpush1.bf16.msra.mxu1 %v111_v15 }
   0xc   :  { %386 = vrot.lane.b32.xlu0 %v912_v10, %s1020_s21 }
   0xe   :  { %458 = vrot.lane.b32.xlu1 %v899_v7, %s1021_s26 }
  0x10   :  { %456 = vrot.lane.b32.xlu0 %v898_v3, %s1021_s26 }
  0x12   :  { %532 = vrot.lane.b32.xlu1 %v893_v11, %s1021_s26  ;;  %v1015_v11 = vld [vmem:[%s1184_s2 + $0x8] sm:$0xff]  }
  0x14   :  { %460 = vrot.lane.b32.xlu0 %v995_v1, %s1021_s26 }
  0x15   :  { %901 = vmatmul.mubr.msk.bf16.vlgmr.msra.gmra.mrb[0].mxu1 %vm43_vm1, %v1011_v16 }
  0x16   :  { %536 = vrot.lane.b32.xlu1 %v1001_v12, %s1021_s26  ;;  %744 = vmatprep.mubr.bf16.mxu1 %v1019_v2  ;;  %v1016_v12 = vld [vmem:[%s1184_s2 + $0x10] sm:$0xff]  }
  0x18   :  { %534 = vrot.lane.b32.xlu0 %v894_v8, %s1021_s26 }
  0x1a   :  { %606 = vrot.lane.b32.xlu1 %v899_v7, %s1022_s29 }
  0x1c   :  { %604 = vrot.lane.b32.xlu0 %v898_v3, %s1022_s29 }
  0x20   :  { %608 = vrot.lane.b32.xlu0 %v995_v1, %s1022_s29 }
  0x74   :  { %v175_v18 = vpop.permute.xlu1 %174 }
  0x76   :  { %v171_v17 = vpop.permute.xlu0 %170 }
  0x78   :  { %v385_v27 = vpop.permute.xlu1 %384 }
  0x7a   :  { %v173_v19 = vpop.permute.xlu0 %172 }
  0x7b   :  { %v178_v20 = vsel %vm176_vm2, %v173_v19, %v175_v18  ;;  %v177_v21 = vsel %vm176_vm2, %v171_v17, %v173_v19 }
  0x7c   :  { %906 = vmatprep.subr.msk.bf16.mxu0 %vm47_vm0, %v178_v20  ;;  %v183_v23 = vsel %vm47_vm0, %v177_v21, 0  ;;  %v389_v30 = vpop.permute.xlu1 %388 }
  0x7d   :  { %189 = vmatpush1.bf16.msra.mxu0 %v183_v23 }
  0x7e   :  { %913 = vmatprep.subr.msk.bf16.mxu0 %vm47_vm0, %v912_v10  ;;  %v387_v31 = vpop.permute.xlu0 %386  ;;  %v1014_v10 = vld [vmem:[%s1184_s2] sm:$0xff]  }
  0x7f   :  { %v391_v33 = vsel %vm176_vm2, %v387_v31, %v389_v30  ;;  %v390_v35 = vsel %vm176_vm2, %v385_v27, %v387_v31 }
  0x80   :  { %907 = vmatmul.mubr.msk.bf16.vlgmr.msra.gmra.mrb[0].mxu0 %vm43_vm1, %v1003_v24  ;;  %v459_v37 = vpop.permute.xlu1 %458  ;;  %v396_v39 = vsel %vm47_vm0, %v390_v35, 0 }
  0x81   :  { %258 = vmatpush1.bf16.msra.mxu0 %v252_v25  ;;  %289 = vmatprep.mubr.bf16.mxu0 %v1019_v2 }
  0x82   :  { %920 = vmatprep.subr.msk.bf16.mxu0 %vm47_vm0, %v919_v26  ;;  %v457_v34 = vpop.permute.xlu0 %456 }
  0x83   :  { %v463_v42 = vsel %vm462_vm3, %v457_v34, %v459_v37 }
  0x84   :  { %v533_v41 = vpop.permute.xlu1 %532  ;;  %v469_v46 = vsel %vm47_vm0, %v463_v42, 0 }
  0x86   :  { %v461_v38 = vpop.permute.xlu0 %460 }
  0x87   :  { %v464_v40 = vsel %vm462_vm3, %v459_v37, %v461_v38 }
  0x88   :  { %v537_v44 = vpop.permute.xlu1 %536 }
  0x8a   :  { %v535_v45 = vpop.permute.xlu0 %534 }
  0x8b   :  { %v539_v47 = vsel %vm462_vm3, %v535_v45, %v537_v44  ;;  %v538_v49 = vsel %vm462_vm3, %v533_v41, %v535_v45 }
  0x8c   :  { %914 = vmatmul.mubr.msk.bf16.vlgmr.msra.gmra.mrb[0].mxu0 %vm43_vm1, %v1004_v29  ;;  %v607_v51 = vpop.permute.xlu1 %606  ;;  %v544_v53 = vsel %vm47_vm0, %v538_v49, 0 }
  0x8d   :  { %327 = vmatpush1.bf16.msra.mxu0 %v321_v32  ;;  %358 = vmatprep.mubr.bf16.mxu0 %v1019_v2 }
  0x8e   :  { %926 = vmatprep.subr.msk.bf16.mxu0 %vm47_vm0, %v391_v33  ;;  %v605_v48 = vpop.permute.xlu0 %604 }
  0x8f   :  { %v611_v55 = vsel %vm610_vm4, %v605_v48, %v607_v51 }
  0x90   :  { %v617_v57 = vsel %vm47_vm0, %v611_v55, 0 }
  0x92   :  { %v609_v52 = vpop.permute.xlu0 %608 }
  0x93   :  { %v612_v54 = vsel %vm610_vm4, %v607_v51, %v609_v52 }
  0x98   :  { %921 = vmatmul.mubr.msk.bf16.vlgmr.msra.gmra.mrb[0].mxu0 %vm43_vm1, %v1007_v36 }
  0x99   :  { %402 = vmatpush1.bf16.msra.mxu0 %v396_v39  ;;  %433 = vmatprep.mubr.bf16.mxu0 %v1019_v2 }
  0x9a   :  { %931 = vmatprep.subr.msk.bf16.mxu0 %vm47_vm0, %v464_v40 }
  0xa4   :  { %927 = vmatmul.mubr.msk.bf16.vlgmr.msra.gmra.mrb[0].mxu0 %vm43_vm1, %v1008_v43 }
  0xa5   :  { %475 = vmatpush1.bf16.msra.mxu0 %v469_v46  ;;  %506 = vmatprep.mubr.bf16.mxu0 %v1019_v2 }
  0xa6   :  { %937 = vmatprep.subr.msk.bf16.mxu0 %vm47_vm0, %v539_v47 }
  0xb0   :  { %932 = vmatmul.mubr.msk.bf16.vlgmr.msra.gmra.mrb[0].mxu0 %vm43_vm1, %v1010_v50 }
  0xb1   :  { %550 = vmatpush1.bf16.msra.mxu0 %v544_v53  ;;  %581 = vmatprep.mubr.bf16.mxu0 %v1019_v2  ;;  %v1018_v53 = vld [vmem:[%s1185_s3] sm:$0xff]  }
  0xb2   :  { %942 = vmatprep.subr.msk.bf16.mxu0 %vm47_vm0, %v612_v54 }
  0xbc   :  { %938 = vmatmul.mubr.msk.bf16.vlgmr.msra.gmra.mrb[0].mxu0 %vm43_vm1, %v1012_v56 }
  0xbd   :  { %623 = vmatpush1.bf16.msra.mxu0 %v617_v57  ;;  %654 = vmatprep.mubr.bf16.mxu0 %v1019_v2 }
  0xc8   :  { %943 = vmatmul.mubr.msk.bf16.vlgmr.msra.gmra.mrb[0].mxu0 %vm43_vm1, %v1013_v58 }
  0xe8   :  { %v150_v59 = vpop.f32.mrb[0].mxu1 }
  0xe9   :  { %v152_v60 = vpop.f32.mrb[1].mxu1 }
  0xea   :  { %v154_v61 = vpop.f32.mrb[2].mxu1 }
  0xeb   :  { %v156_v62 = vpop.f32.mrb[3].mxu1 }
 0x19b   :  { %v656_v63 = vpop.f32.mrb[0].mxu0 }
 0x19c   :  { %v1141_v0 = vadd.f32 %v656_v63, %v150_v59  ;;  %v658_v1 = vpop.f32.mrb[1].mxu0 }
 0x19d   :  { %v1143_v3 = vadd.f32 %v658_v1, %v152_v60  ;;  %v660_v4 = vpop.f32.mrb[2].mxu0 }
 0x19e   :  { %v1145_v5 = vadd.f32 %v660_v4, %v154_v61  ;;  %v662_v6 = vpop.f32.mrb[3].mxu0 }
 0x19f   :  { %v1147_v7 = vadd.f32 %v662_v6, %v156_v62 }
 0x1a0   :  { %v677_v9 = vpack.c.bf16 %v1145_v5, %v1141_v0 }
 0x1a1   :  { %v678_v8 = vpack.c.bf16 %v1147_v7, %v1143_v3 }
 0x1a3   :  { %712 = vmatprep.subr.bf16.mxu1 %v678_v8 }
 0x1a4   :  { %713 = vmatpush1.bf16.msra.mxu1 %v677_v9 }
 0x1a7   :  { %948 = vmatmul.mubr.msk.bf16.vlgmr.msra.gmra.mrb[4].mxu1 %vm699_vm5, %v1014_v10 }
 0x1a8   :  { %754 = vmatprep.mubr.bf16.mxu1 %v1019_v2 }
 0x1af   :  { %949 = vmatmul.mubr.msk.bf16.gmra.mrb[8].mxu1 %vm699_vm5, %v1015_v11 }
 0x1b0   :  { %764 = vmatprep.mubr.bf16.mxu1 %v1019_v2 }
 0x1b7   :  { %950 = vmatmul.mubr.msk.bf16.gmra.mrb[12].mxu1 %vm699_vm5, %v1016_v12 }
 0x1b8   :  { %774 = vmatprep.mubr.bf16.mxu1 %v1019_v2 }
 0x1bf   :  { %951 = vmatmul.mubr.msk.bf16.gmra.mrb[16].mxu1 %vm699_vm5, %v1017_v13 }
 0x1c0   :  { %852 = vmatprep.mubr.bf16.mxu1 %v1019_v2 }
 0x27a   :  { %v746_v14 = vpop.f32.mrb[4].mxu1 }
 0x27b   :  { %v748_v15 = vpop.f32.mrb[5].mxu1  ;;  %v785_v17 = vmax.f32 %v746_v14, 0.0 }
 0x27c   :  { %v750_v16 = vpop.f32.mrb[6].mxu1  ;;  %v786_v20 = vmax.f32 %v748_v15, 0.0 }
 0x27d   :  { %v787_v18 = vmax.f32 %v750_v16, 0.0  ;;  %v752_v19 = vpop.f32.mrb[7].mxu1 }
 0x27e   :  { %v788_v21 = vmax.f32 %v752_v19, 0.0 }
 0x27f   :  { %v803_v22 = vpack.c.bf16 %v787_v18, %v785_v17 }
 0x280   :  { %v804_v23 = vpack.c.bf16 %v788_v21, %v786_v20 }
 0x282   :  { %v756_v24 = vpop.f32.mrb[8].mxu1  ;;  %820 = vmatprep.subr.bf16.mxu1 %v804_v23 }
 0x283   :  { %v758_v25 = vpop.f32.mrb[9].mxu1  ;;  %821 = vmatpush1.bf16.msra.mxu1 %v803_v22  ;;  %v789_v27 = vmax.f32 %v756_v24, 0.0 }
 0x284   :  { %v760_v26 = vpop.f32.mrb[10].mxu1  ;;  %v790_v30 = vmax.f32 %v758_v25, 0.0 }
 0x285   :  { %v791_v28 = vmax.f32 %v760_v26, 0.0  ;;  %v762_v29 = vpop.f32.mrb[11].mxu1 }
 0x286   :  { %v792_v2 = vmax.f32 %v762_v29, 0.0 }
 0x287   :  { %v805_v31 = vpack.c.bf16 %v791_v28, %v789_v27 }
 0x288   :  { %v806_v32 = vpack.c.bf16 %v792_v2, %v790_v30 }
 0x28a   :  { %v766_v33 = vpop.f32.mrb[12].mxu1  ;;  %822 = vmatprep.subr.bf16.mxu1 %v806_v32 }
 0x28b   :  { %v768_v34 = vpop.f32.mrb[13].mxu1  ;;  %823 = vmatpush1.bf16.msra.mxu1 %v805_v31  ;;  %v793_v36 = vmax.f32 %v766_v33, 0.0 }
 0x28c   :  { %v770_v35 = vpop.f32.mrb[14].mxu1  ;;  %v794_v39 = vmax.f32 %v768_v34, 0.0 }
 0x28d   :  { %v795_v37 = vmax.f32 %v770_v35, 0.0  ;;  %v772_v38 = vpop.f32.mrb[15].mxu1 }
 0x28e   :  { %v796_v40 = vmax.f32 %v772_v38, 0.0 }
 0x28f   :  { %v807_v41 = vpack.c.bf16 %v795_v37, %v793_v36 }
 0x290   :  { %v808_v42 = vpack.c.bf16 %v796_v40, %v794_v39 }
 0x292   :  { %v776_v43 = vpop.f32.mrb[16].mxu1  ;;  %824 = vmatprep.subr.bf16.mxu1 %v808_v42 }
 0x293   :  { %v778_v44 = vpop.f32.mrb[17].mxu1  ;;  %825 = vmatpush1.bf16.msra.mxu1 %v807_v41  ;;  %v797_v46 = vmax.f32 %v776_v43, 0.0 }
 0x294   :  { %v780_v45 = vpop.f32.mrb[18].mxu1  ;;  %v798_v49 = vmax.f32 %v778_v44, 0.0 }
 0x295   :  { %v799_v47 = vmax.f32 %v780_v45, 0.0  ;;  %v782_v48 = vpop.f32.mrb[19].mxu1 }
 0x296   :  { %v800_v50 = vmax.f32 %v782_v48, 0.0 }
 0x297   :  { %v809_v51 = vpack.c.bf16 %v799_v47, %v797_v46 }
 0x298   :  { %v810_v52 = vpack.c.bf16 %v800_v50, %v798_v49 }
 0x29a   :  { %826 = vmatprep.subr.bf16.mxu1 %v810_v52 }
 0x29b   :  { %827 = vmatpush1.bf16.msra.mxu1 %v809_v51 }
 0x29e   :  { %953 = vmatmul.mubr.msk.bf16.vlgmr.msra.gmra.mrb[20].mxu1 %vm816_vm6, %v1018_v53 }
 0x371   :  { %v854_v54 = vpop.f32.mrb[20].mxu1 }
 0x372   :  { %v863_v55 = vadd.f32 %v1141_v0, %v854_v54  ;;  %v856_v56 = vpop.f32.mrb[21].mxu1 }
 0x373   :  { %v864_v57 = vadd.f32 %v1143_v3, %v856_v56  ;;  %v858_v58 = vpop.f32.mrb[22].mxu1 }
 0x374   :  { %v865_v59 = vadd.f32 %v1145_v5, %v858_v58  ;;  %v860_v60 = vpop.f32.mrb[23].mxu1 }
 0x375   :  { %v956_v61 = vpack.c.bf16 %v864_v57, %v863_v55  ;;  %v866_v62 = vadd.f32 %v1147_v7, %v860_v60 }
 0x377   :  { %879 = vst [vmem:[%s1186_s4] sm:$0xff] %v956_v61  ;;  %v957_v63 = vpack.c.bf16 %v866_v62, %v865_v59 }
 0x379   :  { %880 = vst [vmem:[%s1186_s4 + $0x8] sm:$0xff] %v957_v63 }

// kernel: _lambda_.6
= control target key start
LH: loop header
LB: loop body
LE: loop exit
PB: predicated region body
PF: predicated region fallthrough
CT: control target
= control target key end

     0   :  { %s1382_s17 = smov 127   ;;  %vm54_vm0 = vcmask 130048   ;;  %s1383_s28 = smov 123   ;;  %vm203_vm1 = vcmask 1039360   ;;  %vm527_vm2 = vcmask 1006592   ;;  %vm691_vm3 = vcmask 998400   ;;  %s1565_s0 = inlined_call_operand.vmem [shape: bf16[4,16,256], index: 0, kind: input, shape index: {}]   ;;  %s1566_s1 = inlined_call_operand.vmem [shape: bf16[9,32,16], index: 1, kind: input, shape index: {}]   ;;  %s1567_s2 = inlined_call_operand.vmem [shape: bf16[1,128,32], index: 2, kind: input, shape index: {}]   ;;  %s1568_s3 = inlined_call_operand.vmem [shape: bf16[1,32,128], index: 3, kind: input, shape index: {}]   ;;  %s1569_s4 = inlined_call_operand.vmem [shape: bf16[32,128], index: 4, kind: output, shape index: {}]  }
   0x1   :  { %v1344_v0 = vld [vmem:[%s1565_s0] ss:$8 sps:$4 sm:$0xff]   ;;  %v1346_v1 = vld [vmem:[%s1565_s0 + $0x4] ss:$8 sps:$4 sm:$0xff]   ;;  %v1352_v4 = vld [vmem:[%s1565_s0 + $0x10] ss:$8 sps:$4 sm:$0xff]  }
   0x2   :  { %199 = vrot.lane.b32.xlu0 %v1344_v0, %s1382_s17  ;;  %v1347_v2 = vld [vmem:[%s1565_s0 + $0x20] ss:$8 sps:$4 sm:$0xff]   ;;  %v1349_v3 = vld [vmem:[%s1565_s0 + $0x24] ss:$8 sps:$4 sm:$0xff]   ;;  %1215 = vmatprep.subr.bf16.mxu1 %v1352_v4  ;;  %v1350_v6 = vld [vmem:[%s1565_s0 + $0x14] ss:$8 sps:$4 sm:$0xff]  }
   0x3   :  { %443 = vrot.lane.b32.xlu1 %v1347_v2, %s1382_s17  ;;  %v1353_v5 = vld [vmem:[%s1566_s1 + $0x20] sm:$0xff]   ;;  %1216 = vmatpush3.bf16.msra.mxu1 %v1352_v4  ;;  %s1384_s5 = smov 122   ;;  %v1362_v7 = vld [vmem:[%s1566_s1 + $0x10] sm:$0xff]   ;;  %v1363_v8 = vld [vmem:[%s1566_s1 + $0x18] sm:$0xff]   ;;  %vm811_vm4 = vcmask 261120  }
   0x4   :  { %1229 = vmatprep.mubr.msk.bf16.mxu0 %vm54_vm0, %v1353_v5  ;;  %1221 = vmatprep.subr.bf16.mxu1 %v1344_v0  ;;  %v1366_v9 = vld [vmem:[%s1566_s1] sm:$0xff]   ;;  %v1367_v10 = vld [vmem:[%s1566_s1 + $0x8] sm:$0xff]   ;;  %v1355_v15 = vld [vmem:[%s1566_s1 + $0x30] sm:$0xff]  }
   0x5   :  { %1217 = vmatprep.mubr.msk.bf16.mxu1 %vm54_vm0, %v1362_v7  ;;  %v1354_v14 = vld [vmem:[%s1566_s1 + $0x28] sm:$0xff]   ;;  %v1357_v16 = vld [vmem:[%s1565_s0 + $0x30] ss:$8 sps:$4 sm:$0xff]   ;;  %v1358_v20 = vld [vmem:[%s1566_s1 + $0x40] sm:$0xff]  }
   0x6   :  { %201 = vrot.lane.b32.xlu0 %v1346_v1, %s1382_s17  ;;  %1218 = vmatmul.mubr.msk.bf16.vlgmr.msra.gmra.mrb[0].mxu1 %vm54_vm0, %v1363_v8  ;;  %v1356_v18 = vld [vmem:[%s1566_s1 + $0x38] sm:$0xff]   ;;  %v1359_v22 = vld [vmem:[%s1566_s1 + $0x48] sm:$0xff]   ;;  %v1360_v25 = vld [vmem:[%s1566_s1 + $0x50] sm:$0xff]  }
   0x7   :  { %445 = vrot.lane.b32.xlu1 %v1349_v3, %s1382_s17  ;;  %1222 = vmatpush3.bf16.msra.mxu1 %v1344_v0  ;;  %v1361_v27 = vld [vmem:[%s1566_s1 + $0x58] sm:$0xff]   ;;  %v1364_v30 = vld [vmem:[%s1566_s1 + $0x60] sm:$0xff]   ;;  %v1365_v32 = vld [vmem:[%s1566_s1 + $0x68] sm:$0xff]  }
   0x8   :  { %1223 = vmatprep.mubr.msk.bf16.mxu1 %vm54_vm0, %v1366_v9  ;;  %v1368_v35 = vld [vmem:[%s1566_s1 + $0x70] sm:$0xff]   ;;  %v1369_v37 = vld [vmem:[%s1566_s1 + $0x78] sm:$0xff]   ;;  %v1370_v38 = vld [vmem:[%s1566_s1 + $0x80] sm:$0xff]  }
   0x9   :  { %v1371_v39 = vld [vmem:[%s1566_s1 + $0x88] sm:$0xff]   ;;  %v1372_v44 = vld [vmem:[%s1567_s2] sm:$0xff]   ;;  %v1374_v56 = vld [vmem:[%s1567_s2 + $0x10] sm:$0xff]  }
   0xa   :  { %523 = vrot.lane.b32.xlu0 %v1344_v0, %s1383_s28  ;;  %v1373_v55 = vld [vmem:[%s1567_s2 + $0x8] sm:$0xff]   ;;  %v1375_v57 = vld [vmem:[%s1567_s2 + $0x18] sm:$0xff]   ;;  %v1376_v58 = vld [vmem:[%s1567_s2 + $0x20] sm:$0xff]  }
   0xb   :  { %525 = vrot.lane.b32.xlu1 %v1346_v1, %s1383_s28  ;;  %v1377_v59 = vld [vmem:[%s1567_s2 + $0x28] sm:$0xff]   ;;  %v1378_v60 = vld [vmem:[%s1567_s2 + $0x30] sm:$0xff]   ;;  %v1379_v61 = vld [vmem:[%s1567_s2 + $0x38] sm:$0xff]  }
   0xc   :  { %v1380_v62 = vld [vmem:[%s1568_s3] sm:$0xff]  }
   0xe   :  { %607 = vrot.lane.b32.xlu0 %v1352_v4, %s1383_s28 }
   0xf   :  { %609 = vrot.lane.b32.xlu1 %v1350_v6, %s1383_s28 }
  0x12   :  { %687 = vrot.lane.b32.xlu0 %v1344_v0, %s1384_s5  ;;  %1224 = vmatmul.mubr.msk.bf16.vlgmr.msra.gmra.mrb[0].mxu1 %vm54_vm0, %v1367_v10 }
  0x13   :  { %689 = vrot.lane.b32.xlu1 %v1346_v1, %s1384_s5  ;;  %1273 = vmatprep.mubr.msk.bf16.mxu1 %vm811_vm4, %v1372_v44 }
  0x74   :  { %v200_v11 = vpop.permute.xlu0 %199 }
  0x75   :  { %v444_v17 = vpop.permute.xlu1 %443 }
  0x78   :  { %v202_v12 = vpop.permute.xlu0 %201 }
  0x79   :  { %v204_v13 = vsel %vm203_vm1, %v200_v11, %v202_v12  ;;  %v446_v19 = vpop.permute.xlu1 %445 }
  0x7a   :  { %1227 = vmatprep.subr.bf16.mxu0 %v204_v13  ;;  %v447_v21 = vsel %vm203_vm1, %v444_v17, %v446_v19 }
  0x7b   :  { %1228 = vmatpush3.bf16.msra.mxu0 %v204_v13 }
  0x7c   :  { %1233 = vmatprep.subr.bf16.mxu0 %v1347_v2  ;;  %v524_v24 = vpop.permute.xlu0 %523 }
  0x7d   :  { %v526_v23 = vpop.permute.xlu1 %525 }
  0x7e   :  { %1230 = vmatmul.mubr.msk.bf16.vlgmr.msra.gmra.mrb[0].mxu0 %vm54_vm0, %v1354_v14  ;;  %v528_v26 = vsel %vm527_vm2, %v524_v24, %v526_v23 }
  0x7f   :  { %1234 = vmatpush3.bf16.msra.mxu0 %v1347_v2  ;;  %1235 = vmatprep.mubr.msk.bf16.mxu0 %vm54_vm0, %v1355_v15 }
  0x80   :  { %1239 = vmatprep.subr.bf16.mxu0 %v1357_v16  ;;  %v608_v29 = vpop.permute.xlu0 %607 }
  0x81   :  { %v610_v28 = vpop.permute.xlu1 %609 }
  0x82   :  { %v611_v31 = vsel %vm527_vm2, %v608_v29, %v610_v28 }
  0x84   :  { %v688_v34 = vpop.permute.xlu0 %687 }
  0x85   :  { %v690_v33 = vpop.permute.xlu1 %689 }
  0x86   :  { %v692_v36 = vsel %vm691_vm3, %v688_v34, %v690_v33 }
  0x8a   :  { %1236 = vmatmul.mubr.msk.bf16.vlgmr.msra.gmra.mrb[0].mxu0 %vm54_vm0, %v1356_v18 }
  0x8b   :  { %1240 = vmatpush3.bf16.msra.mxu0 %v1357_v16  ;;  %1241 = vmatprep.mubr.msk.bf16.mxu0 %vm54_vm0, %v1358_v20 }
  0x8c   :  { %1245 = vmatprep.subr.bf16.mxu0 %v447_v21 }
  0x96   :  { %1242 = vmatmul.mubr.msk.bf16.vlgmr.msra.gmra.mrb[0].mxu0 %vm54_vm0, %v1359_v22 }
  0x97   :  { %1246 = vmatpush3.bf16.msra.mxu0 %v447_v21  ;;  %1247 = vmatprep.mubr.msk.bf16.mxu0 %vm54_vm0, %v1360_v25 }
  0x98   :  { %1251 = vmatprep.subr.bf16.mxu0 %v528_v26 }
  0xa2   :  { %1248 = vmatmul.mubr.msk.bf16.vlgmr.msra.gmra.mrb[0].mxu0 %vm54_vm0, %v1361_v27 }
  0xa3   :  { %1252 = vmatpush3.bf16.msra.mxu0 %v528_v26  ;;  %1253 = vmatprep.mubr.msk.bf16.mxu0 %vm54_vm0, %v1364_v30 }
  0xa4   :  { %1257 = vmatprep.subr.bf16.mxu0 %v611_v31 }
  0xae   :  { %1254 = vmatmul.mubr.msk.bf16.vlgmr.msra.gmra.mrb[0].mxu0 %vm54_vm0, %v1365_v32 }
  0xaf   :  { %1258 = vmatpush3.bf16.msra.mxu0 %v611_v31  ;;  %1259 = vmatprep.mubr.msk.bf16.mxu0 %vm54_vm0, %v1368_v35 }
  0xb0   :  { %1263 = vmatprep.subr.bf16.mxu0 %v692_v36 }
  0xba   :  { %1260 = vmatmul.mubr.msk.bf16.vlgmr.msra.gmra.mrb[0].mxu0 %vm54_vm0, %v1369_v37 }
  0xbb   :  { %1264 = vmatpush3.bf16.msra.mxu0 %v692_v36  ;;  %1265 = vmatprep.mubr.msk.bf16.mxu0 %vm54_vm0, %v1370_v38 }
  0xc6   :  { %1266 = vmatmul.mubr.msk.bf16.vlgmr.msra.gmra.mrb[0].mxu0 %vm54_vm0, %v1371_v39  ;;  %v1381_v39 = vld [vmem:[%s1568_s3 + $0x8] sm:$0xff]  }
  0xe5   :  { %v1225_v40 = vpop.f32.mrb[0].mxu1 }
  0xe6   :  { %v166_v41 = vpop.f32.mrb[1].mxu1 }
  0xe7   :  { %v1226_v42 = vpop.f32.mrb[2].mxu1 }
  0xe8   :  { %v169_v43 = vpop.f32.mrb[3].mxu1 }
 0x199   :  { %v1267_v45 = vpop.f32.mrb[0].mxu0 }
 0x19a   :  { %v1509_v46 = vadd.f32 %v1267_v45, %v1225_v40  ;;  %v734_v47 = vpop.f32.mrb[1].mxu0 }
 0x19b   :  { %v1511_v48 = vadd.f32 %v734_v47, %v166_v41  ;;  %v1268_v49 = vpop.f32.mrb[2].mxu0 }
 0x19c   :  { %v1513_v50 = vadd.f32 %v1268_v49, %v1226_v42  ;;  %v737_v51 = vpop.f32.mrb[3].mxu0 }
 0x19d   :  { %v1515_v52 = vadd.f32 %v737_v51, %v169_v43 }
 0x19e   :  { %v770_v54 = vpack.c.bf16 %v1513_v50, %v1509_v46 }
 0x19f   :  { %v769_v53 = vpack.c.bf16 %v1515_v52, %v1511_v48 }
 0x1a1   :  { %1269 = vmatprep.subr.bf16.mxu1 %v769_v53 }
 0x1a2   :  { %1270 = vmatpush3.bf16.msra.mxu1 %v769_v53 }
 0x1a3   :  { %1271 = vmatprep.subr.bf16.mxu1 %v770_v54 }
 0x1a6   :  { %1272 = vmatpush3.bf16.msra.mxu1 %v770_v54 }
 0x1a9   :  { %1274 = vmatmul.mubr.msk.bf16.vlgmr.msra.gmra.mrb[4].mxu1 %vm811_vm4, %v1373_v55 }
 0x1aa   :  { %1277 = vmatprep.mubr.msk.bf16.mxu1 %vm811_vm4, %v1374_v56 }
 0x1b1   :  { %1278 = vmatmul.mubr.msk.bf16.gmra.mrb[8].mxu1 %vm811_vm4, %v1375_v57 }
 0x1b2   :  { %1281 = vmatprep.mubr.msk.bf16.mxu1 %vm811_vm4, %v1376_v58 }
 0x1b9   :  { %1282 = vmatmul.mubr.msk.bf16.gmra.mrb[12].mxu1 %vm811_vm4, %v1377_v59 }
 0x1ba   :  { %1285 = vmatprep.mubr.msk.bf16.mxu1 %vm811_vm4, %v1378_v60 }
 0x1c1   :  { %1286 = vmatmul.mubr.msk.bf16.gmra.mrb[16].mxu1 %vm811_vm4, %v1379_v61 }
 0x1c2   :  { %1305 = vmatprep.mubr.bf16.mxu1 %v1380_v62 }
 0x27c   :  { %v1275_v63 = vpop.f32.mrb[4].mxu1 }
 0x27d   :  { %v870_v0 = vpop.f32.mrb[5].mxu1  ;;  %v935_v2 = vmax.f32 %v1275_v63, 0.0 }
 0x27e   :  { %v1276_v1 = vpop.f32.mrb[6].mxu1  ;;  %v933_v5 = vmax.f32 %v870_v0, 0.0 }
 0x27f   :  { %v936_v3 = vmax.f32 %v1276_v1, 0.0  ;;  %v873_v4 = vpop.f32.mrb[7].mxu1 }
 0x280   :  { %v934_v6 = vmax.f32 %v873_v4, 0.0 }
 0x281   :  { %v954_v7 = vpack.c.bf16 %v936_v3, %v935_v2 }
 0x282   :  { %v953_v8 = vpack.c.bf16 %v934_v6, %v933_v5 }
 0x284   :  { %v1279_v9 = vpop.f32.mrb[8].mxu1  ;;  %1289 = vmatprep.subr.bf16.mxu1 %v953_v8 }
 0x285   :  { %v886_v10 = vpop.f32.mrb[9].mxu1  ;;  %1290 = vmatpush3.bf16.msra.mxu1 %v953_v8  ;;  %v939_v12 = vmax.f32 %v1279_v9, 0.0 }
 0x286   :  { %v1280_v11 = vpop.f32.mrb[10].mxu1  ;;  %1291 = vmatprep.subr.bf16.mxu1 %v954_v7  ;;  %v937_v15 = vmax.f32 %v886_v10, 0.0 }
 0x287   :  { %v940_v13 = vmax.f32 %v1280_v11, 0.0  ;;  %v889_v14 = vpop.f32.mrb[11].mxu1 }
 0x288   :  { %v938_v16 = vmax.f32 %v889_v14, 0.0 }
 0x289   :  { %v956_v17 = vpack.c.bf16 %v940_v13, %v939_v12  ;;  %1292 = vmatpush3.bf16.msra.mxu1 %v954_v7 }
 0x28a   :  { %v955_v18 = vpack.c.bf16 %v938_v16, %v937_v15 }
 0x28c   :  { %v1283_v19 = vpop.f32.mrb[12].mxu1  ;;  %1293 = vmatprep.subr.bf16.mxu1 %v955_v18 }
 0x28d   :  { %v902_v20 = vpop.f32.mrb[13].mxu1  ;;  %1294 = vmatpush3.bf16.msra.mxu1 %v955_v18  ;;  %v943_v22 = vmax.f32 %v1283_v19, 0.0 }
 0x28e   :  { %v1284_v21 = vpop.f32.mrb[14].mxu1  ;;  %1295 = vmatprep.subr.bf16.mxu1 %v956_v17  ;;  %v941_v25 = vmax.f32 %v902_v20, 0.0 }
 0x28f   :  { %v944_v23 = vmax.f32 %v1284_v21, 0.0  ;;  %v905_v24 = vpop.f32.mrb[15].mxu1 }
 0x290   :  { %v942_v26 = vmax.f32 %v905_v24, 0.0 }
 0x291   :  { %v958_v27 = vpack.c.bf16 %v944_v23, %v943_v22  ;;  %1296 = vmatpush3.bf16.msra.mxu1 %v956_v17 }
 0x292   :  { %v957_v28 = vpack.c.bf16 %v942_v26, %v941_v25 }
 0x294   :  { %v1287_v29 = vpop.f32.mrb[16].mxu1  ;;  %1297 = vmatprep.subr.bf16.mxu1 %v957_v28 }
 0x295   :  { %v918_v30 = vpop.f32.mrb[17].mxu1  ;;  %1298 = vmatpush3.bf16.msra.mxu1 %v957_v28  ;;  %v947_v32 = vmax.f32 %v1287_v29, 0.0 }
 0x296   :  { %v1288_v31 = vpop.f32.mrb[18].mxu1  ;;  %1299 = vmatprep.subr.bf16.mxu1 %v958_v27  ;;  %v945_v35 = vmax.f32 %v918_v30, 0.0 }
 0x297   :  { %v948_v33 = vmax.f32 %v1288_v31, 0.0  ;;  %v921_v34 = vpop.f32.mrb[19].mxu1 }
 0x298   :  { %v946_v36 = vmax.f32 %v921_v34, 0.0 }
 0x299   :  { %v960_v37 = vpack.c.bf16 %v948_v33, %v947_v32  ;;  %1300 = vmatpush3.bf16.msra.mxu1 %v958_v27 }
 0x29a   :  { %v959_v38 = vpack.c.bf16 %v946_v36, %v945_v35 }
 0x29c   :  { %1301 = vmatprep.subr.bf16.mxu1 %v959_v38 }
 0x29d   :  { %1302 = vmatpush3.bf16.msra.mxu1 %v959_v38 }
 0x29e   :  { %1303 = vmatprep.subr.bf16.mxu1 %v960_v37 }
 0x2a1   :  { %1304 = vmatpush3.bf16.msra.mxu1 %v960_v37 }
 0x2a4   :  { %1306 = vmatmul.mubr.bf16.vlgmr.msra.gmra.mrb[20].mxu1 %v1381_v39 }
 0x377   :  { %v1307_v40 = vpop.f32.mrb[20].mxu1 }
 0x378   :  { %v1007_v41 = vpop.f32.mrb[21].mxu1  ;;  %v1024_v43 = vadd.f32 %v1509_v46, %v1307_v40 }
 0x379   :  { %v1308_v42 = vpop.f32.mrb[22].mxu1  ;;  %v1022_v47 = vadd.f32 %v1511_v48, %v1007_v41 }
 0x37a   :  { %v1025_v44 = vadd.f32 %v1513_v50, %v1308_v42  ;;  %v1010_v45 = vpop.f32.mrb[23].mxu1 }
 0x37b   :  { %v1023_v49 = vadd.f32 %v1515_v52, %v1010_v45 }
 0x37c   :  { %v1165_v51 = vpack.c.bf16 %v1025_v44, %v1024_v43 }
 0x37d   :  { %v1160_v53 = vpack.c.bf16 %v1023_v49, %v1022_v47 }
 0x37e   :  { %1167 = vst [vmem:[%s1569_s4 + $0x8] sm:$0xff] %v1165_v51  }
 0x37f   :  { %1161 = vst [vmem:[%s1569_s4] sm:$0xff] %v1160_v53  }

// kernel: _lambda_.7
= control target key start
LH: loop header
LB: loop body
LE: loop exit
PB: predicated region body
PF: predicated region fallthrough
CT: control target
= control target key end

     0   :  { %s2369_s19 = smov 127   ;;  %vm86_vm0 = vcmask 261120   ;;  %s2370_s21 = smov 125   ;;  %vm316_vm1 = vcmask 1039360   ;;  %vm827_vm2 = vcmask 1022976   ;;  %vm1086_vm3 = vcmask 1014784   ;;  %s2736_s0 = inlined_call_operand.vmem [shape: bf16[4,32,256], index: 0, kind: input, shape index: {}]   ;;  %s2737_s1 = inlined_call_operand.vmem [shape: bf16[9,64,32], index: 1, kind: input, shape index: {}]   ;;  %s2738_s2 = inlined_call_operand.vmem [shape: bf16[1,256,64], index: 2, kind: input, shape index: {}]   ;;  %s2739_s3 = inlined_call_operand.vmem [shape: bf16[1,64,256], index: 3, kind: input, shape index: {}]   ;;  %s2740_s4 = inlined_call_operand.vmem [shape: bf16[64,128], index: 4, kind: output, shape index: {}]  }
   0x1   :  { %v2285_v0 = vld [vmem:[%s2736_s0 + $0x10] ss:$8 sps:$4 sm:$0xff]   ;;  %v2287_v1 = vld [vmem:[%s2736_s0] ss:$8 sps:$4 sm:$0xff]   ;;  %v2289_v2 = vld [vmem:[%s2736_s0 + $0x14] ss:$8 sps:$4 sm:$0xff]  }
   0x2   :  { %312 = vrot.lane.b32.xlu1 %v2285_v0, %s2369_s19  ;;  %308 = vrot.lane.b32.xlu0 %v2287_v1, %s2369_s19  ;;  %v2290_v3 = vld [vmem:[%s2736_s0 + $0x4] ss:$8 sps:$4 sm:$0xff]   ;;  %v2299_v5 = vld [vmem:[%s2736_s0 + $0x20] ss:$8 sps:$4 sm:$0xff]   ;;  %s2371_s25 = smov 124   ;;  %vm1292_vm4 = vcmask 523264  }
   0x3   :  { %2082 = vmatprep.subr.bf16.mxu0 %v2287_v1  ;;  %v2291_v4 = vld [vmem:[%s2736_s0 + $0x44] ss:$8 sps:$4 sm:$0xff]   ;;  %v2422_v6 = vld [vmem:[%s2736_s0 + $0x40] ss:$8 sps:$4 sm:$0xff]   ;;  %v2294_v7 = vld [vmem:[%s2736_s0 + $0x54] ss:$8 sps:$4 sm:$0xff]   ;;  %2070 = vmatprep.subr.bf16.mxu1 %v2299_v5 }
   0x4   :  { %2083 = vmatpush3.bf16.msra.mxu0 %v2287_v1  ;;  %v2302_v8 = vld [vmem:[%s2736_s0 + $0x30] ss:$8 sps:$4 sm:$0xff]   ;;  %v2303_v9 = vld [vmem:[%s2737_s1] sm:$0xff]   ;;  %v2304_v10 = vld [vmem:[%s2737_s1 + $0x8] sm:$0xff]   ;;  %2071 = vmatpush3.bf16.msra.mxu1 %v2299_v5 }
   0x5   :  { %2084 = vmatprep.subr.bf16.mxu0 %v2285_v0  ;;  %2086 = vmatprep.mubr.msk.bf16.mxu0 %vm86_vm0, %v2303_v9  ;;  %v2305_v11 = vld [vmem:[%s2737_s1 + $0x10] sm:$0xff]   ;;  %v2306_v13 = vld [vmem:[%s2737_s1 + $0x18] sm:$0xff]   ;;  %v2307_v14 = vld [vmem:[%s2737_s1 + $0x40] sm:$0xff]  }
   0x6   :  { %314 = vrot.lane.b32.xlu1 %v2289_v2, %s2369_s19  ;;  %310 = vrot.lane.b32.xlu0 %v2290_v3, %s2369_s19  ;;  %v2296_v12 = vld [vmem:[%s2736_s0 + $0x50] ss:$8 sps:$4 sm:$0xff]   ;;  %v2297_v15 = vld [vmem:[%s2736_s0 + $0x24] ss:$8 sps:$4 sm:$0xff]  }
   0x7   :  { %2072 = vmatprep.subr.bf16.mxu1 %v2302_v8  ;;  %v2300_v16 = vld [vmem:[%s2736_s0 + $0x34] ss:$8 sps:$4 sm:$0xff]   ;;  %v2333_v17 = vld [vmem:[%s2737_s1 + $0x20] sm:$0xff]   ;;  %v2334_v18 = vld [vmem:[%s2737_s1 + $0x28] sm:$0xff]  }
   0x8   :  { %2085 = vmatpush3.bf16.msra.mxu0 %v2285_v0  ;;  %2073 = vmatpush3.bf16.msra.mxu1 %v2302_v8  ;;  %v2337_v19 = vld [vmem:[%s2737_s1 + $0x30] sm:$0xff]   ;;  %v2338_v20 = vld [vmem:[%s2737_s1 + $0x38] sm:$0xff]   ;;  %v2308_v27 = vld [vmem:[%s2737_s1 + $0x48] sm:$0xff]  }
   0x9   :  { %2074 = vmatprep.mubr.msk.bf16.mxu1 %vm86_vm0, %v2333_v17  ;;  %v2309_v28 = vld [vmem:[%s2737_s1 + $0x50] sm:$0xff]   ;;  %v2315_v29 = vld [vmem:[%s2736_s0 + $0x60] ss:$8 sps:$4 sm:$0xff]   ;;  %v2310_v30 = vld [vmem:[%s2737_s1 + $0x58] sm:$0xff]  }
   0xa   :  { %695 = vrot.lane.b32.xlu1 %v2291_v4, %s2369_s19  ;;  %693 = vrot.lane.b32.xlu0 %v2422_v6, %s2369_s19  ;;  %v2311_v31 = vld [vmem:[%s2737_s1 + $0x60] sm:$0xff]   ;;  %v2312_v32 = vld [vmem:[%s2737_s1 + $0x68] sm:$0xff]  }
   0xb   :  { %2087 = vmatmul.mubr.msk.bf16.vlgmr.msra.gmra.mrb[0].mxu0 %vm86_vm0, %v2304_v10  ;;  %2075 = vmatmul.mubr.msk.bf16.vlgmr.msra.gmra.mrb[0].mxu1 %vm86_vm0, %v2334_v18  ;;  %v2313_v33 = vld [vmem:[%s2737_s1 + $0x70] sm:$0xff]   ;;  %v2314_v38 = vld [vmem:[%s2737_s1 + $0x78] sm:$0xff]   ;;  %v2317_v39 = vld [vmem:[%s2737_s1 + $0x80] sm:$0xff]  }
   0xc   :  { %2090 = vmatprep.mubr.msk.bf16.mxu0 %vm86_vm0, %v2305_v11  ;;  %2078 = vmatprep.mubr.msk.bf16.mxu1 %vm86_vm0, %v2337_v19  ;;  %v2316_v34 = vld [vmem:[%s2736_s0 + $0x70] ss:$8 sps:$4 sm:$0xff]   ;;  %v2318_v40 = vld [vmem:[%s2737_s1 + $0x88] sm:$0xff]   ;;  %v2321_v49 = vld [vmem:[%s2737_s1 + $0xa0] sm:$0xff]  }
   0xd   :  { %v2319_v43 = vld [vmem:[%s2737_s1 + $0x90] sm:$0xff]   ;;  %v2320_v48 = vld [vmem:[%s2737_s1 + $0x98] sm:$0xff]   ;;  %v2322_v50 = vld [vmem:[%s2737_s1 + $0xa8] sm:$0xff]  }
   0xe   :  { %699 = vrot.lane.b32.xlu1 %v2294_v7, %s2369_s19  ;;  %697 = vrot.lane.b32.xlu0 %v2296_v12, %s2369_s19  ;;  %v2323_v53 = vld [vmem:[%s2737_s1 + $0xb0] sm:$0xff]   ;;  %v2324_v58 = vld [vmem:[%s2737_s1 + $0xb8] sm:$0xff]  }
   0xf   :  { %v2325_v59 = vld [vmem:[%s2737_s1 + $0xc0] sm:$0xff]   ;;  %v2326_v60 = vld [vmem:[%s2737_s1 + $0xc8] sm:$0xff]   ;;  %v2327_v63 = vld [vmem:[%s2737_s1 + $0xd0] sm:$0xff]  }
  0x10   :  { %v2328_v4 = vld [vmem:[%s2737_s1 + $0xd8] sm:$0xff]   ;;  %v2331_v9 = vld [vmem:[%s2737_s1 + $0xf0] sm:$0xff]  }
  0x11   :  { %v2332_v11 = vld [vmem:[%s2737_s1 + $0xf8] sm:$0xff]  }
  0x12   :  { %821 = vrot.lane.b32.xlu1 %v2290_v3, %s2370_s21  ;;  %819 = vrot.lane.b32.xlu0 %v2287_v1, %s2370_s21 }
  0x13   :  { %2091 = vmatmul.mubr.msk.bf16.gmra.mrb[4].mxu0 %vm86_vm0, %v2306_v13  ;;  %2079 = vmatmul.mubr.msk.bf16.gmra.mrb[4].mxu1 %vm86_vm0, %v2338_v20  ;;  %v2336_v13 = vld [vmem:[%s2737_s1 + $0x108] sm:$0xff]  }
  0x14   :  { %2098 = vmatprep.mubr.msk.bf16.mxu0 %vm86_vm0, %v2307_v14  ;;  %v2339_v14 = vld [vmem:[%s2737_s1 + $0x110] sm:$0xff]  }
  0x16   :  { %825 = vrot.lane.b32.xlu1 %v2289_v2, %s2370_s21  ;;  %823 = vrot.lane.b32.xlu0 %v2285_v0, %s2370_s21 }
  0x1a   :  { %954 = vrot.lane.b32.xlu1 %v2297_v15, %s2370_s21  ;;  %952 = vrot.lane.b32.xlu0 %v2299_v5, %s2370_s21  ;;  %v2329_v5 = vld [vmem:[%s2737_s1 + $0xe0] sm:$0xff]   ;;  %v2340_v15 = vld [vmem:[%s2737_s1 + $0x118] sm:$0xff]  }
  0x1e   :  { %958 = vrot.lane.b32.xlu1 %v2300_v16, %s2370_s21  ;;  %956 = vrot.lane.b32.xlu0 %v2302_v8, %s2370_s21 }
  0x22   :  { %1080 = vrot.lane.b32.xlu1 %v2290_v3, %s2371_s25  ;;  %1078 = vrot.lane.b32.xlu0 %v2287_v1, %s2371_s25 }
  0x26   :  { %1084 = vrot.lane.b32.xlu1 %v2289_v2, %s2371_s25  ;;  %1082 = vrot.lane.b32.xlu0 %v2285_v0, %s2371_s25 }
  0x74   :  { %v313_v21 = vpop.permute.xlu1 %312  ;;  %v309_v22 = vpop.permute.xlu0 %308 }
  0x78   :  { %v315_v23 = vpop.permute.xlu1 %314  ;;  %v311_v24 = vpop.permute.xlu0 %310 }
  0x79   :  { %v317_v25 = vsel %vm316_vm1, %v309_v22, %v311_v24  ;;  %v318_v26 = vsel %vm316_vm1, %v313_v21, %v315_v23  ;;  %v2341_v24 = vld [vmem:[%s2738_s2] sm:$0xff]  }
  0x7a   :  { %2094 = vmatprep.subr.bf16.mxu0 %v317_v25  ;;  %2186 = vmatprep.mubr.msk.bf16.mxu1 %vm1292_vm4, %v2341_v24 }
  0x7b   :  { %2095 = vmatpush3.bf16.msra.mxu0 %v317_v25 }
  0x7c   :  { %2096 = vmatprep.subr.bf16.mxu0 %v318_v26  ;;  %v696_v35 = vpop.permute.xlu1 %695  ;;  %v694_v36 = vpop.permute.xlu0 %693 }
  0x7d   :  { %v701_v37 = vsel %vm316_vm1, %v694_v36, %v696_v35 }
  0x7f   :  { %2097 = vmatpush3.bf16.msra.mxu0 %v318_v26 }
  0x80   :  { %2106 = vmatprep.subr.bf16.mxu0 %v2422_v6  ;;  %v700_v41 = vpop.permute.xlu1 %699  ;;  %v698_v42 = vpop.permute.xlu0 %697 }
  0x81   :  { %v702_v44 = vsel %vm316_vm1, %v698_v42, %v700_v41 }
  0x82   :  { %2099 = vmatmul.mubr.msk.bf16.vlgmr.msra.gmra.mrb[0].mxu0 %vm86_vm0, %v2308_v27 }
  0x83   :  { %2102 = vmatprep.mubr.msk.bf16.mxu0 %vm86_vm0, %v2309_v28  ;;  %2107 = vmatpush3.bf16.msra.mxu0 %v2422_v6  ;;  %v2330_v6 = vld [vmem:[%s2737_s1 + $0xe8] sm:$0xff]  }
  0x84   :  { %2108 = vmatprep.subr.bf16.mxu0 %v2296_v12  ;;  %v822_v45 = vpop.permute.xlu1 %821  ;;  %v820_v46 = vpop.permute.xlu0 %819 }
  0x85   :  { %v828_v47 = vsel %vm827_vm2, %v820_v46, %v822_v45  ;;  %v2342_v45 = vld [vmem:[%s2738_s2 + $0x8] sm:$0xff]   ;;  %v2343_v46 = vld [vmem:[%s2738_s2 + $0x10] sm:$0xff]  }
  0x87   :  { %2109 = vmatpush3.bf16.msra.mxu0 %v2296_v12  ;;  %v2335_v12 = vld [vmem:[%s2737_s1 + $0x100] sm:$0xff]  }
  0x88   :  { %2118 = vmatprep.subr.bf16.mxu0 %v2315_v29  ;;  %v826_v51 = vpop.permute.xlu1 %825  ;;  %v824_v52 = vpop.permute.xlu0 %823 }
  0x89   :  { %v829_v54 = vsel %vm827_vm2, %v824_v52, %v826_v51  ;;  %v2348_v51 = vld [vmem:[%s2738_s2 + $0x38] sm:$0xff]   ;;  %v2349_v52 = vld [vmem:[%s2738_s2 + $0x40] sm:$0xff]  }
  0x8a   :  { %2103 = vmatmul.mubr.msk.bf16.gmra.mrb[4].mxu0 %vm86_vm0, %v2310_v30 }
  0x8b   :  { %2110 = vmatprep.mubr.msk.bf16.mxu0 %vm86_vm0, %v2311_v31 }
  0x8c   :  { %v955_v55 = vpop.permute.xlu1 %954  ;;  %v953_v56 = vpop.permute.xlu0 %952 }
  0x8d   :  { %v960_v57 = vsel %vm827_vm2, %v953_v56, %v955_v55  ;;  %v2352_v55 = vld [vmem:[%s2738_s2 + $0x58] sm:$0xff]   ;;  %v2353_v56 = vld [vmem:[%s2738_s2 + $0x60] sm:$0xff]  }
  0x90   :  { %v959_v61 = vpop.permute.xlu1 %958  ;;  %v957_v62 = vpop.permute.xlu0 %956 }
  0x91   :  { %v961_v0 = vsel %vm827_vm2, %v957_v62, %v959_v61 }
  0x92   :  { %2111 = vmatmul.mubr.msk.bf16.vlgmr.msra.gmra.mrb[0].mxu0 %vm86_vm0, %v2312_v32 }
  0x93   :  { %2114 = vmatprep.mubr.msk.bf16.mxu0 %vm86_vm0, %v2313_v33  ;;  %2119 = vmatpush3.bf16.msra.mxu0 %v2315_v29 }
  0x94   :  { %2120 = vmatprep.subr.bf16.mxu0 %v2316_v34  ;;  %v1081_v1 = vpop.permute.xlu1 %1080  ;;  %v1079_v2 = vpop.permute.xlu0 %1078 }
  0x95   :  { %v1087_v3 = vsel %vm1086_vm3, %v1079_v2, %v1081_v1 }
  0x97   :  { %2121 = vmatpush3.bf16.msra.mxu0 %v2316_v34 }
  0x98   :  { %2130 = vmatprep.subr.bf16.mxu0 %v701_v37  ;;  %v1085_v7 = vpop.permute.xlu1 %1084  ;;  %v1083_v8 = vpop.permute.xlu0 %1082 }
  0x99   :  { %v1088_v10 = vsel %vm1086_vm3, %v1083_v8, %v1085_v7 }
  0x9a   :  { %2115 = vmatmul.mubr.msk.bf16.gmra.mrb[4].mxu0 %vm86_vm0, %v2314_v38 }
  0x9b   :  { %2122 = vmatprep.mubr.msk.bf16.mxu0 %vm86_vm0, %v2317_v39 }
  0xa2   :  { %2123 = vmatmul.mubr.msk.bf16.vlgmr.msra.gmra.mrb[0].mxu0 %vm86_vm0, %v2318_v40 }
  0xa3   :  { %2126 = vmatprep.mubr.msk.bf16.mxu0 %vm86_vm0, %v2319_v43  ;;  %2131 = vmatpush3.bf16.msra.mxu0 %v701_v37 }
  0xa4   :  { %2132 = vmatprep.subr.bf16.mxu0 %v702_v44 }
  0xa7   :  { %2133 = vmatpush3.bf16.msra.mxu0 %v702_v44 }
  0xa8   :  { %2142 = vmatprep.subr.bf16.mxu0 %v828_v47 }
  0xaa   :  { %2127 = vmatmul.mubr.msk.bf16.gmra.mrb[4].mxu0 %vm86_vm0, %v2320_v48  ;;  %v2345_v48 = vld [vmem:[%s2738_s2 + $0x20] sm:$0xff]  }
  0xab   :  { %2134 = vmatprep.mubr.msk.bf16.mxu0 %vm86_vm0, %v2321_v49  ;;  %v2346_v49 = vld [vmem:[%s2738_s2 + $0x28] sm:$0xff]  }
  0xb2   :  { %2135 = vmatmul.mubr.msk.bf16.vlgmr.msra.gmra.mrb[0].mxu0 %vm86_vm0, %v2322_v50  ;;  %v2347_v50 = vld [vmem:[%s2738_s2 + $0x30] sm:$0xff]  }
  0xb3   :  { %2138 = vmatprep.mubr.msk.bf16.mxu0 %vm86_vm0, %v2323_v53  ;;  %2143 = vmatpush3.bf16.msra.mxu0 %v828_v47  ;;  %v2344_v47 = vld [vmem:[%s2738_s2 + $0x18] sm:$0xff]   ;;  %v2350_v53 = vld [vmem:[%s2738_s2 + $0x48] sm:$0xff]  }
  0xb4   :  { %2144 = vmatprep.subr.bf16.mxu0 %v829_v54 }
  0xb7   :  { %2145 = vmatpush3.bf16.msra.mxu0 %v829_v54  ;;  %v2351_v54 = vld [vmem:[%s2738_s2 + $0x50] sm:$0xff]  }
  0xb8   :  { %2154 = vmatprep.subr.bf16.mxu0 %v960_v57 }
  0xba   :  { %2139 = vmatmul.mubr.msk.bf16.gmra.mrb[4].mxu0 %vm86_vm0, %v2324_v58  ;;  %v2355_v58 = vld [vmem:[%s2738_s2 + $0x70] sm:$0xff]  }
  0xbb   :  { %2146 = vmatprep.mubr.msk.bf16.mxu0 %vm86_vm0, %v2325_v59  ;;  %v2356_v59 = vld [vmem:[%s2738_s2 + $0x78] sm:$0xff]  }
  0xc2   :  { %2147 = vmatmul.mubr.msk.bf16.vlgmr.msra.gmra.mrb[0].mxu0 %vm86_vm0, %v2326_v60  ;;  %v2359_v60 = vld [vmem:[%s2739_s3 + $0x4] ss:$8 sps:$4 sm:$0xff]  }
  0xc3   :  { %2150 = vmatprep.mubr.msk.bf16.mxu0 %vm86_vm0, %v2327_v63  ;;  %2155 = vmatpush3.bf16.msra.mxu0 %v960_v57  ;;  %v2354_v57 = vld [vmem:[%s2738_s2 + $0x68] sm:$0xff]  }
  0xc4   :  { %2156 = vmatprep.subr.bf16.mxu0 %v961_v0 }
  0xc7   :  { %2157 = vmatpush3.bf16.msra.mxu0 %v961_v0 }
  0xc8   :  { %2166 = vmatprep.subr.bf16.mxu0 %v1087_v3 }
  0xca   :  { %2151 = vmatmul.mubr.msk.bf16.gmra.mrb[4].mxu0 %vm86_vm0, %v2328_v4 }
  0xcb   :  { %2158 = vmatprep.mubr.msk.bf16.mxu0 %vm86_vm0, %v2329_v5 }
  0xd2   :  { %2159 = vmatmul.mubr.msk.bf16.vlgmr.msra.gmra.mrb[0].mxu0 %vm86_vm0, %v2330_v6 }
  0xd3   :  { %2162 = vmatprep.mubr.msk.bf16.mxu0 %vm86_vm0, %v2331_v9  ;;  %2167 = vmatpush3.bf16.msra.mxu0 %v1087_v3 }
  0xd4   :  { %2168 = vmatprep.subr.bf16.mxu0 %v1088_v10 }
  0xd7   :  { %2169 = vmatpush3.bf16.msra.mxu0 %v1088_v10 }
  0xda   :  { %2163 = vmatmul.mubr.msk.bf16.gmra.mrb[4].mxu0 %vm86_vm0, %v2332_v11 }
  0xdb   :  { %2170 = vmatprep.mubr.msk.bf16.mxu0 %vm86_vm0, %v2335_v12 }
  0xde   :  { %v2076_v16 = vpop.f32.mrb[0].mxu1 }
  0xdf   :  { %v133_v17 = vpop.f32.mrb[1].mxu1 }
  0xe0   :  { %v2077_v18 = vpop.f32.mrb[2].mxu1 }
  0xe1   :  { %v136_v19 = vpop.f32.mrb[3].mxu1 }
  0xe2   :  { %2171 = vmatmul.mubr.msk.bf16.vlgmr.msra.gmra.mrb[0].mxu0 %vm86_vm0, %v2336_v13 }
  0xe3   :  { %2174 = vmatprep.mubr.msk.bf16.mxu0 %vm86_vm0, %v2339_v14 }
  0xe6   :  { %v2080_v20 = vpop.f32.mrb[4].mxu1 }
  0xe7   :  { %v149_v21 = vpop.f32.mrb[5].mxu1 }
  0xe8   :  { %v2081_v22 = vpop.f32.mrb[6].mxu1 }
  0xe9   :  { %v152_v23 = vpop.f32.mrb[7].mxu1 }
  0xea   :  { %2175 = vmatmul.mubr.msk.bf16.gmra.mrb[4].mxu0 %vm86_vm0, %v2340_v15 }
 0x1b5   :  { %v2172_v25 = vpop.f32.mrb[0].mxu0 }
 0x1b6   :  { %v2608_v26 = vadd.f32 %v2172_v25, %v2076_v16  ;;  %v1137_v27 = vpop.f32.mrb[1].mxu0 }
 0x1b7   :  { %v2610_v28 = vadd.f32 %v1137_v27, %v133_v17  ;;  %v2173_v29 = vpop.f32.mrb[2].mxu0 }
 0x1b8   :  { %v2612_v30 = vadd.f32 %v2173_v29, %v2077_v18  ;;  %v1140_v31 = vpop.f32.mrb[3].mxu0 }
 0x1b9   :  { %v2614_v32 = vadd.f32 %v1140_v31, %v136_v19 }
 0x1ba   :  { %v1209_v34 = vpack.c.bf16 %v2612_v30, %v2608_v26 }
 0x1bb   :  { %v1208_v33 = vpack.c.bf16 %v2614_v32, %v2610_v28 }
 0x1bd   :  { %v2176_v35 = vpop.f32.mrb[4].mxu0  ;;  %2178 = vmatprep.subr.bf16.mxu1 %v1208_v33 }
 0x1be   :  { %v2620_v36 = vadd.f32 %v2176_v35, %v2080_v20  ;;  %v1153_v37 = vpop.f32.mrb[5].mxu0  ;;  %2179 = vmatpush3.bf16.msra.mxu1 %v1208_v33 }
 0x1bf   :  { %v2622_v38 = vadd.f32 %v1153_v37, %v149_v21  ;;  %v2177_v39 = vpop.f32.mrb[6].mxu0  ;;  %2180 = vmatprep.subr.bf16.mxu1 %v1209_v34 }
 0x1c0   :  { %v2624_v40 = vadd.f32 %v2177_v39, %v2081_v22  ;;  %v1156_v41 = vpop.f32.mrb[7].mxu0 }
 0x1c1   :  { %v2626_v42 = vadd.f32 %v1156_v41, %v152_v23 }
 0x1c2   :  { %2181 = vmatpush3.bf16.msra.mxu1 %v1209_v34  ;;  %v1211_v44 = vpack.c.bf16 %v2624_v40, %v2620_v36 }
 0x1c3   :  { %v1210_v43 = vpack.c.bf16 %v2626_v42, %v2622_v38 }
 0x1c5   :  { %2182 = vmatprep.subr.bf16.mxu1 %v1210_v43 }
 0x1c6   :  { %2183 = vmatpush3.bf16.msra.mxu1 %v1210_v43 }
 0x1c7   :  { %2184 = vmatprep.subr.bf16.mxu1 %v1211_v44 }
 0x1ca   :  { %2185 = vmatpush3.bf16.msra.mxu1 %v1211_v44 }
 0x1cd   :  { %2187 = vmatmul.mubr.msk.bf16.vlgmr.msra.gmra.mrb[8].mxu1 %vm1292_vm4, %v2342_v45 }
 0x1ce   :  { %2190 = vmatprep.mubr.msk.bf16.mxu1 %vm1292_vm4, %v2343_v46 }
 0x1d5   :  { %2191 = vmatmul.mubr.msk.bf16.gmra.mrb[12].mxu1 %vm1292_vm4, %v2344_v47 }
 0x1d6   :  { %2194 = vmatprep.mubr.msk.bf16.mxu1 %vm1292_vm4, %v2345_v48 }
 0x1dd   :  { %2195 = vmatmul.mubr.msk.bf16.gmra.mrb[16].mxu1 %vm1292_vm4, %v2346_v49 }
 0x1de   :  { %2198 = vmatprep.mubr.msk.bf16.mxu1 %vm1292_vm4, %v2347_v50 }
 0x1e5   :  { %2199 = vmatmul.mubr.msk.bf16.gmra.mrb[20].mxu1 %vm1292_vm4, %v2348_v51 }
 0x1e6   :  { %2202 = vmatprep.mubr.msk.bf16.mxu1 %vm1292_vm4, %v2349_v52 }
 0x1ed   :  { %2203 = vmatmul.mubr.msk.bf16.gmra.mrb[24].mxu1 %vm1292_vm4, %v2350_v53 }
 0x1ee   :  { %2206 = vmatprep.mubr.msk.bf16.mxu1 %vm1292_vm4, %v2351_v54 }
 0x1f5   :  { %2207 = vmatmul.mubr.msk.bf16.gmra.mrb[28].mxu1 %vm1292_vm4, %v2352_v55 }
 0x1f6   :  { %2210 = vmatprep.mubr.msk.bf16.mxu1 %vm1292_vm4, %v2353_v56 }
 0x1fd   :  { %2211 = vmatmul.mubr.msk.bf16.gmra.mrb[32].mxu1 %vm1292_vm4, %v2354_v57 }
 0x1fe   :  { %2214 = vmatprep.mubr.msk.bf16.mxu1 %vm1292_vm4, %v2355_v58 }
 0x205   :  { %2215 = vmatmul.mubr.msk.bf16.gmra.mrb[36].mxu1 %vm1292_vm4, %v2356_v59 }
 0x206   :  { %1630 = vmatprep.mubr.bf16.mxu1 %v2359_v60 }
 0x2a0   :  { %v2188_v61 = vpop.f32.mrb[8].mxu1 }
 0x2a1   :  { %v1375_v62 = vpop.f32.mrb[9].mxu1  ;;  %v1504_v0 = vmax.f32 %v2188_v61, 0.0 }
 0x2a2   :  { %v2189_v63 = vpop.f32.mrb[10].mxu1  ;;  %v1502_v3 = vmax.f32 %v1375_v62, 0.0 }
 0x2a3   :  { %v1505_v1 = vmax.f32 %v2189_v63, 0.0  ;;  %v1378_v2 = vpop.f32.mrb[11].mxu1 }
 0x2a4   :  { %v1503_v4 = vmax.f32 %v1378_v2, 0.0 }
 0x2a5   :  { %v1543_v5 = vpack.c.bf16 %v1505_v1, %v1504_v0 }
 0x2a6   :  { %v1542_v6 = vpack.c.bf16 %v1503_v4, %v1502_v3 }
 0x2a8   :  { %v2192_v7 = vpop.f32.mrb[12].mxu1 }
 0x2a9   :  { %v1391_v8 = vpop.f32.mrb[13].mxu1  ;;  %v1508_v10 = vmax.f32 %v2192_v7, 0.0 }
 0x2aa   :  { %v2193_v9 = vpop.f32.mrb[14].mxu1  ;;  %v1506_v13 = vmax.f32 %v1391_v8, 0.0 }
 0x2ab   :  { %v1509_v11 = vmax.f32 %v2193_v9, 0.0  ;;  %v1394_v12 = vpop.f32.mrb[15].mxu1 }
 0x2ac   :  { %v1507_v14 = vmax.f32 %v1394_v12, 0.0 }
 0x2ad   :  { %v1545_v15 = vpack.c.bf16 %v1509_v11, %v1508_v10 }
 0x2ae   :  { %v1544_v16 = vpack.c.bf16 %v1507_v14, %v1506_v13 }
 0x2b0   :  { %v2196_v17 = vpop.f32.mrb[16].mxu1 }
 0x2b1   :  { %v1407_v18 = vpop.f32.mrb[17].mxu1  ;;  %v1512_v20 = vmax.f32 %v2196_v17, 0.0 }
 0x2b2   :  { %v2197_v19 = vpop.f32.mrb[18].mxu1  ;;  %v1510_v23 = vmax.f32 %v1407_v18, 0.0 }
 0x2b3   :  { %v1513_v21 = vmax.f32 %v2197_v19, 0.0  ;;  %v1410_v22 = vpop.f32.mrb[19].mxu1 }
 0x2b4   :  { %v1511_v24 = vmax.f32 %v1410_v22, 0.0  ;;  %v2360_v22 = vld [vmem:[%s2739_s3 + $0x14] ss:$8 sps:$4 sm:$0xff]  }
 0x2b5   :  { %v1547_v25 = vpack.c.bf16 %v1513_v21, %v1512_v20 }
 0x2b6   :  { %v1546_v27 = vpack.c.bf16 %v1511_v24, %v1510_v23  ;;  %v2362_v23 = vld [vmem:[%s2739_s3 + $0x10] ss:$8 sps:$4 sm:$0xff]   ;;  %v2363_v24 = vld [vmem:[%s2739_s3 + $0x24] ss:$8 sps:$4 sm:$0xff]  }
 0x2b8   :  { %v2200_v29 = vpop.f32.mrb[20].mxu1 }
 0x2b9   :  { %v1423_v31 = vpop.f32.mrb[21].mxu1  ;;  %v1516_v34 = vmax.f32 %v2200_v29, 0.0  ;;  %v2368_v29 = vld [vmem:[%s2739_s3 + $0x30] ss:$8 sps:$4 sm:$0xff]  }
 0x2ba   :  { %v2201_v33 = vpop.f32.mrb[22].mxu1  ;;  %v1514_v39 = vmax.f32 %v1423_v31, 0.0 }
 0x2bb   :  { %v1517_v35 = vmax.f32 %v2201_v33, 0.0  ;;  %v1426_v37 = vpop.f32.mrb[23].mxu1 }
 0x2bc   :  { %v1515_v41 = vmax.f32 %v1426_v37, 0.0 }
 0x2bd   :  { %v1549_v43 = vpack.c.bf16 %v1517_v35, %v1516_v34 }
 0x2be   :  { %v1548_v44 = vpack.c.bf16 %v1515_v41, %v1514_v39 }
 0x2c0   :  { %v2204_v45 = vpop.f32.mrb[24].mxu1 }
 0x2c1   :  { %v1439_v46 = vpop.f32.mrb[25].mxu1  ;;  %v1520_v48 = vmax.f32 %v2204_v45, 0.0 }
 0x2c2   :  { %v2205_v47 = vpop.f32.mrb[26].mxu1  ;;  %v1518_v51 = vmax.f32 %v1439_v46, 0.0 }
 0x2c3   :  { %v1521_v49 = vmax.f32 %v2205_v47, 0.0  ;;  %v1442_v50 = vpop.f32.mrb[27].mxu1 }
 0x2c4   :  { %v1519_v52 = vmax.f32 %v1442_v50, 0.0 }
 0x2c5   :  { %v1551_v53 = vpack.c.bf16 %v1521_v49, %v1520_v48 }
 0x2c6   :  { %v1550_v54 = vpack.c.bf16 %v1519_v52, %v1518_v51 }
 0x2c8   :  { %v2208_v55 = vpop.f32.mrb[28].mxu1  ;;  %2030 = vmatprep.subr.bf16.mxu1 %v1550_v54 }
 0x2c9   :  { %v1455_v56 = vpop.f32.mrb[29].mxu1  ;;  %2031 = vmatpush3.bf16.msra.mxu1 %v1542_v6  ;;  %v1524_v58 = vmax.f32 %v2208_v55, 0.0 }
 0x2ca   :  { %v2209_v57 = vpop.f32.mrb[30].mxu1  ;;  %2032 = vmatprep.subr.bf16.mxu1 %v1551_v53  ;;  %v1522_v61 = vmax.f32 %v1455_v56, 0.0 }
 0x2cb   :  { %v1525_v59 = vmax.f32 %v2209_v57, 0.0  ;;  %v1458_v60 = vpop.f32.mrb[31].mxu1 }
 0x2cc   :  { %v1523_v62 = vmax.f32 %v1458_v60, 0.0 }
 0x2cd   :  { %v1553_v63 = vpack.c.bf16 %v1525_v59, %v1524_v58  ;;  %2033 = vmatpush3.bf16.msra.mxu1 %v1543_v5 }
 0x2ce   :  { %v1552_v0 = vpack.c.bf16 %v1523_v62, %v1522_v61 }
 0x2d0   :  { %v2212_v1 = vpop.f32.mrb[32].mxu1  ;;  %2034 = vmatprep.subr.bf16.mxu1 %v1552_v0 }
 0x2d1   :  { %v1471_v2 = vpop.f32.mrb[33].mxu1  ;;  %2035 = vmatpush3.bf16.msra.mxu1 %v1544_v16  ;;  %v1528_v4 = vmax.f32 %v2212_v1, 0.0 }
 0x2d2   :  { %v2213_v3 = vpop.f32.mrb[34].mxu1  ;;  %2036 = vmatprep.subr.bf16.mxu1 %v1553_v63  ;;  %v1526_v6 = vmax.f32 %v1471_v2, 0.0 }
 0x2d3   :  { %v1529_v7 = vmax.f32 %v2213_v3, 0.0  ;;  %v1474_v8 = vpop.f32.mrb[35].mxu1 }
 0x2d4   :  { %v1527_v9 = vmax.f32 %v1474_v8, 0.0 }
 0x2d5   :  { %v1555_v10 = vpack.c.bf16 %v1529_v7, %v1528_v4  ;;  %2037 = vmatpush3.bf16.msra.mxu1 %v1545_v15  ;;  %v2357_v15 = vld [vmem:[%s2739_s3] ss:$8 sps:$4 sm:$0xff]  }
 0x2d6   :  { %v1554_v11 = vpack.c.bf16 %v1527_v9, %v1526_v6 }
 0x2d8   :  { %v2216_v12 = vpop.f32.mrb[36].mxu1  ;;  %2038 = vmatprep.subr.bf16.mxu1 %v1554_v11 }
 0x2d9   :  { %v1487_v13 = vpop.f32.mrb[37].mxu1  ;;  %2039 = vmatpush3.bf16.msra.mxu1 %v1546_v27  ;;  %v1532_v14 = vmax.f32 %v2216_v12, 0.0  ;;  %v2366_v27 = vld [vmem:[%s2739_s3 + $0x34] ss:$8 sps:$4 sm:$0xff]  }
 0x2da   :  { %v2217_v5 = vpop.f32.mrb[38].mxu1  ;;  %2040 = vmatprep.subr.bf16.mxu1 %v1555_v10  ;;  %v1530_v16 = vmax.f32 %v1487_v13, 0.0 }
 0x2db   :  { %v1533_v17 = vmax.f32 %v2217_v5, 0.0  ;;  %v1490_v18 = vpop.f32.mrb[39].mxu1 }
 0x2dc   :  { %v1531_v19 = vmax.f32 %v1490_v18, 0.0 }
 0x2dd   :  { %v1557_v20 = vpack.c.bf16 %v1533_v17, %v1532_v14  ;;  %2041 = vmatpush3.bf16.msra.mxu1 %v1547_v25  ;;  %v2365_v25 = vld [vmem:[%s2739_s3 + $0x20] ss:$8 sps:$4 sm:$0xff]  }
 0x2de   :  { %v1556_v21 = vpack.c.bf16 %v1531_v19, %v1530_v16 }
 0x2e0   :  { %2042 = vmatprep.subr.bf16.mxu1 %v1556_v21 }
 0x2e1   :  { %2043 = vmatpush3.bf16.msra.mxu1 %v1548_v44 }
 0x2e2   :  { %2044 = vmatprep.subr.bf16.mxu1 %v1557_v20 }
 0x2e5   :  { %2045 = vmatpush3.bf16.msra.mxu1 %v1549_v43 }
 0x2e8   :  { %1631 = vmatmul.mubr.bf16.vlgmr.msra.gmra.mrb[40].mxu1 %v2357_v15 }
 0x2e9   :  { %1638 = vmatprep.mubr.bf16.mxu1 %v2360_v22 }
 0x2f0   :  { %1639 = vmatmul.mubr.bf16.gmra.mrb[44].mxu1 %v2362_v23 }
 0x2f1   :  { %1646 = vmatprep.mubr.bf16.mxu1 %v2363_v24 }
 0x2f8   :  { %1647 = vmatmul.mubr.bf16.gmra.mrb[48].mxu1 %v2365_v25 }
 0x2f9   :  { %1654 = vmatprep.mubr.bf16.mxu1 %v2366_v27 }
 0x300   :  { %1655 = vmatmul.mubr.bf16.gmra.mrb[52].mxu1 %v2368_v29 }
 0x3bb   :  { %v2046_v31 = vpop.f32.mrb[40].mxu1 }
 0x3bc   :  { %v2047_v33 = vpop.f32.mrb[41].mxu1 }
 0x3bd   :  { %v2048_v34 = vadd.f32 %v2047_v33, %v2046_v31  ;;  %v2049_v35 = vpop.f32.mrb[42].mxu1 }
 0x3be   :  { %v2050_v37 = vpop.f32.mrb[43].mxu1 }
 0x3bf   :  { %v2051_v39 = vadd.f32 %v2050_v37, %v2049_v35  ;;  %v1663_v41 = vadd.f32 %v2610_v28, %v2048_v34 }
 0x3c1   :  { %v1664_v43 = vadd.f32 %v2614_v32, %v2051_v39 }
 0x3c3   :  { %v1936_v44 = vpack.c.bf16 %v1664_v43, %v1663_v41  ;;  %v2052_v45 = vpop.f32.mrb[44].mxu1 }
 0x3c4   :  { %v2053_v46 = vpop.f32.mrb[45].mxu1 }
 0x3c5   :  { %1937 = vst [vmem:[%s2740_s4] sm:$0xff] %v1936_v44   ;;  %v2054_v47 = vadd.f32 %v2053_v46, %v2052_v45  ;;  %v2055_v48 = vpop.f32.mrb[46].mxu1 }
 0x3c6   :  { %v2056_v49 = vpop.f32.mrb[47].mxu1 }
 0x3c7   :  { %v2057_v50 = vadd.f32 %v2056_v49, %v2055_v48  ;;  %v1665_v51 = vadd.f32 %v2608_v26, %v2054_v47 }
 0x3c9   :  { %v1666_v52 = vadd.f32 %v2612_v30, %v2057_v50 }
 0x3cb   :  { %v1941_v53 = vpack.c.bf16 %v1666_v52, %v1665_v51  ;;  %v2058_v54 = vpop.f32.mrb[48].mxu1 }
 0x3cc   :  { %v2059_v28 = vpop.f32.mrb[49].mxu1 }
 0x3cd   :  { %1953 = vst [vmem:[%s2740_s4 + $0x8] sm:$0xff] %v1941_v53   ;;  %v2060_v32 = vadd.f32 %v2059_v28, %v2058_v54  ;;  %v2061_v55 = vpop.f32.mrb[50].mxu1 }
 0x3ce   :  { %v2062_v56 = vpop.f32.mrb[51].mxu1 }
 0x3cf   :  { %v2063_v57 = vadd.f32 %v2062_v56, %v2061_v55  ;;  %v1667_v58 = vadd.f32 %v2622_v38, %v2060_v32 }
 0x3d1   :  { %v1668_v59 = vadd.f32 %v2626_v42, %v2063_v57 }
 0x3d3   :  { %v1946_v60 = vpack.c.bf16 %v1668_v59, %v1667_v58  ;;  %v2064_v61 = vpop.f32.mrb[52].mxu1 }
 0x3d4   :  { %v2065_v26 = vpop.f32.mrb[53].mxu1 }
 0x3d5   :  { %1954 = vst [vmem:[%s2740_s4 + $0x10] sm:$0xff] %v1946_v60   ;;  %v2066_v30 = vadd.f32 %v2065_v26, %v2064_v61  ;;  %v2067_v62 = vpop.f32.mrb[54].mxu1 }
 0x3d6   :  { %v2068_v63 = vpop.f32.mrb[55].mxu1 }
 0x3d7   :  { %v2069_v0 = vadd.f32 %v2068_v63, %v2067_v62  ;;  %v1669_v1 = vadd.f32 %v2620_v36, %v2066_v30 }
 0x3d9   :  { %v1670_v2 = vadd.f32 %v2624_v40, %v2069_v0 }
 0x3db   :  { %v1951_v3 = vpack.c.bf16 %v1670_v2, %v1669_v1 }
 0x3dd   :  { %1955 = vst [vmem:[%s2740_s4 + $0x18] sm:$0xff] %v1951_v3  }

</bundles_post_ra>
